<compile_context>
chip_gen: v6e
topology: v6e:2x2x1
jax: 0.10.0
libtpu: 0.0.40
codegen_flags: <defaults>
</compile_context>

<pallas_src>
import functools

import jax
import jax.numpy as jnp
from jax.experimental import pallas as pl
from jax.experimental.pallas import tpu as pltpu


def _round_up(x, m):
    return (x + m - 1) // m * m


def _mlp_edge_kernel(srcT_ref, dstT_ref, w1sT_ref, w1dT_ref, b1_ref, w2_ref,
                     b2_ref, out_ref):
    # srcT_ref, dstT_ref : [Hp, TE]  gathered endpoint features, feature-major
    # w1sT_ref, w1dT_ref : [Hp, Hp]  W1 split into src/dst halves, transposed
    # b1_ref, w2_ref     : [Hp, 1]   bias / second-layer weight columns
    # b2_ref             : [1, 1]    SMEM scalar
    # out_ref            : [1, TE]   lane-dense edge scores
    h1t = jnp.dot(w1sT_ref[...], srcT_ref[...],
                  preferred_element_type=jnp.float32)
    h1t = h1t + jnp.dot(w1dT_ref[...], dstT_ref[...],
                        preferred_element_type=jnp.float32)
    h1t = jnp.maximum(h1t + b1_ref[...], 0.0)                    # bias + ReLU
    # Second linear layer (H -> 1): VPU multiply + cross-sublane reduce instead
    # of an N=1 MXU matmul; result is [1, TE], i.e. already lane-dense.
    s = jnp.sum(h1t * w2_ref[...], axis=0, keepdims=True)
    out_ref[...] = (s + b2_ref[0, 0]).astype(out_ref.dtype)


@functools.partial(jax.jit, static_argnames=("tile_e",))
def mlp_predictor_forward(h, src_idx, dst_idx, w1, b1, w2, b2, *, tile_e=512):
    """Pallas implementation of MLPPredictor.forward.

    h       : [N, H] node features
    src_idx : [E] int32 edge source node ids
    dst_idx : [E] int32 edge destination node ids
    w1      : [2H, H]  (PyTorch W1.weight transposed)
    b1      : [H]
    w2      : [H, 1]   (PyTorch W2.weight transposed)
    b2      : [1]
    returns : [E] float32 edge scores
    """
    assert tile_e % 128 == 0, "tile_e must be a multiple of the 128-lane width"
    E = src_idx.shape[0]
    N, H = h.shape
    Hp = _round_up(H, 128)            # pad feature dim to full lane width
    E_pad = _round_up(E, tile_e)      # pad edge count to a tile multiple
    pad_f = Hp - H

    # --- wrapper glue: padding + parameter re-layout (tiny one-off XLA ops) ---
    h_p = jnp.pad(h, ((0, 0), (0, pad_f)))                        # [N, Hp]
    src_p = jnp.pad(src_idx, (0, E_pad - E))                      # [E_pad]
    dst_p = jnp.pad(dst_idx, (0, E_pad - E))                      # [E_pad]

    # Split W1 into src/dst halves (kills the in-kernel concat) and transpose
    # everything into the feature-major layout the kernel uses.
    w1_srcT = jnp.pad(w1[:H], ((0, pad_f), (0, pad_f))).T         # [Hp_out, Hp_in]
    w1_dstT = jnp.pad(w1[H:], ((0, pad_f), (0, pad_f))).T         # [Hp_out, Hp_in]
    b1_col = jnp.pad(b1, (0, pad_f)).reshape(Hp, 1)               # [Hp, 1]
    w2_col = jnp.pad(w2[:, 0], (0, pad_f)).reshape(Hp, 1)         # [Hp, 1]
    b2_2d = b2.reshape(1, 1)                                      # [1, 1] (SMEM)

    # Endpoint gather (graph indexing), feature-major.
    # TODO(synk): fuse this gather into the kernel (scalar-prefetched indices +
    # in-kernel / DMA gather from h kept in VMEM or HBM) to drop the extra
    # E x Hp round trip through HBM on large graphs.
    h_srcT = h_p[src_p].T                                         # [Hp, E_pad]
    h_dstT = h_p[dst_p].T                                         # [Hp, E_pad]

    grid = (E_pad // tile_e,)

    out = pl.pallas_call(
        _mlp_edge_kernel,
        out_shape=jax.ShapeDtypeStruct((1, E_pad), jnp.float32),
        grid_spec=pltpu.PrefetchScalarGridSpec(
            num_scalar_prefetch=0,
            grid=grid,
            in_specs=[
                pl.BlockSpec((Hp, tile_e), lambda i: (0, i)),      # h_srcT tile
                pl.BlockSpec((Hp, tile_e), lambda i: (0, i)),      # h_dstT tile
                pl.BlockSpec((Hp, Hp), lambda i: (0, 0)),          # W1 src half (T)
                pl.BlockSpec((Hp, Hp), lambda i: (0, 0)),          # W1 dst half (T)
                pl.BlockSpec((Hp, 1), lambda i: (0, 0)),           # b1 column
                pl.BlockSpec((Hp, 1), lambda i: (0, 0)),           # w2 column
                pl.BlockSpec(memory_space=pltpu.MemorySpace.SMEM), # b2 scalar
            ],
            out_specs=pl.BlockSpec((1, tile_e), lambda i: (0, i)),
        ),
        compiler_params=pltpu.CompilerParams(
            dimension_semantics=("parallel",),      # shards edge axis on v7x 2-TC
            vmem_limit_bytes=32 * 1024 * 1024,      # far above need; safe on v7x's 64 MiB
        ),
    )(h_srcT, h_dstT, w1_srcT, w1_dstT, b1_col, w2_col, b2_2d)

    return out[0, :E]   # drop edge padding, squeeze -> [E]


def _reference_forward(h, src_idx, dst_idx, w1, b1, w2, b2):
    x = jnp.concatenate([h[src_idx], h[dst_idx]], axis=1)
    h1 = jnp.maximum(x @ w1 + b1, 0.0)
    return (h1 @ w2 + b2)[:, 0]


if __name__ == "__main__":
    key = jax.random.PRNGKey(0)
    k_h, k_src, k_dst, k_w1, k_b1, k_w2, k_b2 = jax.random.split(key, 7)

    # Small synthetic "graph": N nodes, E edges, h_feats = H.
    # E deliberately not a multiple of the tile to exercise edge padding.
    N, H, E = 16, 32, 200

    h = jax.random.normal(k_h, (N, H), dtype=jnp.float32)
    src_idx = jax.random.randint(k_src, (E,), 0, N, dtype=jnp.int32)
    dst_idx = jax.random.randint(k_dst, (E,), 0, N, dtype=jnp.int32)

    # Deterministic parameter init matching nn.Linear shapes:
    #   W1: Linear(2H, H)  -> weight [H, 2H], bias [H]   (stored transposed: [2H, H])
    #   W2: Linear(H, 1)   -> weight [1, H],  bias [1]   (stored transposed: [H, 1])
    lim1 = 1.0 / jnp.sqrt(2.0 * H)
    lim2 = 1.0 / jnp.sqrt(1.0 * H)
    w1 = jax.random.uniform(k_w1, (2 * H, H), jnp.float32, -lim1, lim1)
    b1 = jax.random.uniform(k_b1, (H,), jnp.float32, -lim1, lim1)
    w2 = jax.random.uniform(k_w2, (H, 1), jnp.float32, -lim2, lim2)
    b2 = jax.random.uniform(k_b2, (1,), jnp.float32, -lim2, lim2)

    scores = mlp_predictor_forward(h, src_idx, dst_idx, w1, b1, w2, b2)
    scores = jax.block_until_ready(scores)

    ref = _reference_forward(h, src_idx, dst_idx, w1, b1, w2, b2)
    assert scores.shape == (E,)
    assert jnp.allclose(scores, ref, atol=1e-4, rtol=1e-4), (
        float(jnp.max(jnp.abs(scores - ref))))

    print("KERNEL_OK")
</pallas_src>

<mosaic_0001>
module attributes {stable_mosaic.version = 11 : i64} {
  func.func @_mlp_edge_kernel(%arg0: i32, %arg1: memref<128x512xf32, #tpu.memory_space<vmem>>, %arg2: memref<128x512xf32, #tpu.memory_space<vmem>>, %arg3: memref<128x128xf32, #tpu.memory_space<vmem>>, %arg4: memref<128x128xf32, #tpu.memory_space<vmem>>, %arg5: memref<128x1xf32, #tpu.memory_space<vmem>>, %arg6: memref<128x1xf32, #tpu.memory_space<vmem>>, %arg7: memref<1x1xf32, #tpu.memory_space<smem>>, %arg8: memref<1x512xf32, #tpu.memory_space<vmem>>) attributes {dimension_semantics = [#tpu.dimension_semantics<parallel>], iteration_bounds = array<i64: 1>, scalar_prefetch = 0 : i64, scratch_operands = 0 : i64, tpu.core_type = #tpu.core_type<tc>, window_params = [{transform_indices = @transform_0, window_bounds = array<i64: 128, 512>}, {transform_indices = @transform_1, window_bounds = array<i64: 128, 512>}, {pipeline_mode = #tpu.pipeline_mode<synchronous>, transform_indices = @transform_2, window_bounds = array<i64: 128, 128>}, {pipeline_mode = #tpu.pipeline_mode<synchronous>, transform_indices = @transform_3, window_bounds = array<i64: 128, 128>}, {pipeline_mode = #tpu.pipeline_mode<synchronous>, transform_indices = @transform_4, window_bounds = array<i64: 128, 1>}, {pipeline_mode = #tpu.pipeline_mode<synchronous>, transform_indices = @transform_5, window_bounds = array<i64: 128, 1>}, {transform_indices = @transform_6, window_bounds = array<i64: 1, 1>}, {transform_indices = @transform_7, window_bounds = array<i64: 1, 512>}]} {
    %c0 = arith.constant 0 : index
    %c0_0 = arith.constant 0 : index
    %0 = vector.load %arg3[%c0, %c0_0] : memref<128x128xf32, #tpu.memory_space<vmem>>, vector<128x128xf32>
    %c0_1 = arith.constant 0 : index
    %c0_2 = arith.constant 0 : index
    %1 = vector.load %arg1[%c0_1, %c0_2] : memref<128x512xf32, #tpu.memory_space<vmem>>, vector<128x512xf32>
    %cst = arith.constant dense<0.000000e+00> : vector<128x512xf32>
    %2 = tpu.matmul %0, %1, %cst {dimension_numbers = #tpu.dot_dimension_numbers<[1], [0], [0], [1], [0, 0, 1, 1], [], []>} : vector<128x128xf32>, vector<128x512xf32>, vector<128x512xf32> -> vector<128x512xf32>
    %c0_3 = arith.constant 0 : index
    %c0_4 = arith.constant 0 : index
    %3 = vector.load %arg4[%c0_3, %c0_4] : memref<128x128xf32, #tpu.memory_space<vmem>>, vector<128x128xf32>
    %c0_5 = arith.constant 0 : index
    %c0_6 = arith.constant 0 : index
    %4 = vector.load %arg2[%c0_5, %c0_6] : memref<128x512xf32, #tpu.memory_space<vmem>>, vector<128x512xf32>
    %cst_7 = arith.constant dense<0.000000e+00> : vector<128x512xf32>
    %5 = tpu.matmul %3, %4, %cst_7 {dimension_numbers = #tpu.dot_dimension_numbers<[1], [0], [0], [1], [0, 0, 1, 1], [], []>} : vector<128x128xf32>, vector<128x512xf32>, vector<128x512xf32> -> vector<128x512xf32>
    %6 = arith.addf %2, %5 : vector<128x512xf32>
    %c0_8 = arith.constant 0 : index
    %c0_9 = arith.constant 0 : index
    %7 = vector.load %arg5[%c0_8, %c0_9] : memref<128x1xf32, #tpu.memory_space<vmem>>, vector<128x1xf32>
    %8 = vector.broadcast %7 : vector<128x1xf32> to vector<128x512xf32>
    %9 = arith.addf %6, %8 : vector<128x512xf32>
    %cst_10 = arith.constant 0.000000e+00 : f32
    %10 = vector.broadcast %cst_10 : f32 to vector<128x512xf32>
    %11 = arith.maximumf %9, %10 : vector<128x512xf32>
    %c0_11 = arith.constant 0 : index
    %c0_12 = arith.constant 0 : index
    %12 = vector.load %arg6[%c0_11, %c0_12] : memref<128x1xf32, #tpu.memory_space<vmem>>, vector<128x1xf32>
    %13 = vector.broadcast %12 : vector<128x1xf32> to vector<128x512xf32>
    %14 = arith.mulf %11, %13 : vector<128x512xf32>
    %cst_13 = arith.constant dense<0.000000e+00> : vector<512xf32>
    %15 = vector.multi_reduction <add>, %14, %cst_13 [0] : vector<128x512xf32> to vector<512xf32>
    %16 = vector.shape_cast %15 : vector<512xf32> to vector<1x512xf32>
    %c0_14 = arith.constant 0 : index
    %c0_15 = arith.constant 0 : index
    %17 = memref.load %arg7[%c0_14, %c0_15] : memref<1x1xf32, #tpu.memory_space<smem>>
    %18 = vector.broadcast %17 : f32 to vector<1x512xf32>
    %19 = arith.addf %16, %18 : vector<1x512xf32>
    %c0_16 = arith.constant 0 : index
    %c0_17 = arith.constant 0 : index
    %20 = vector.load %arg8[%c0_16, %c0_17] : memref<1x512xf32, #tpu.memory_space<vmem>>, vector<1x512xf32>
    tpu.vector_store %arg8[%c0_16, %c0_17], %19 {strides = array<i32>} : memref<1x512xf32, #tpu.memory_space<vmem>>, vector<1x512xf32>,
    return
  }
  func.func @transform_0(%arg0: i32) -> (i32, i32) {
    %c0_i32 = arith.constant 0 : i32
    %c0_i32_0 = arith.constant 0 : i32
    return %c0_i32, %arg0 : i32, i32
  }
  func.func @transform_1(%arg0: i32) -> (i32, i32) {
    %c0_i32 = arith.constant 0 : i32
    %c0_i32_0 = arith.constant 0 : i32
    return %c0_i32, %arg0 : i32, i32
  }
  func.func @transform_2(%arg0: i32) -> (i32, i32) {
    %c0_i32 = arith.constant 0 : i32
    %c0_i32_0 = arith.constant 0 : i32
    %c0_i32_1 = arith.constant 0 : i32
    return %c0_i32, %c0_i32_0 : i32, i32
  }
  func.func @transform_3(%arg0: i32) -> (i32, i32) {
    %c0_i32 = arith.constant 0 : i32
    %c0_i32_0 = arith.constant 0 : i32
    %c0_i32_1 = arith.constant 0 : i32
    return %c0_i32, %c0_i32_0 : i32, i32
  }
  func.func @transform_4(%arg0: i32) -> (i32, i32) {
    %c0_i32 = arith.constant 0 : i32
    %c0_i32_0 = arith.constant 0 : i32
    %c0_i32_1 = arith.constant 0 : i32
    return %c0_i32, %c0_i32_0 : i32, i32
  }
  func.func @transform_5(%arg0: i32) -> (i32, i32) {
    %c0_i32 = arith.constant 0 : i32
    %c0_i32_0 = arith.constant 0 : i32
    %c0_i32_1 = arith.constant 0 : i32
    return %c0_i32, %c0_i32_0 : i32, i32
  }
  func.func @transform_6(%arg0: i32) -> (i32, i32) {
    %c0_i32 = arith.constant 0 : i32
    %c0_i32_0 = arith.constant 0 : i32
    %c0_i32_1 = arith.constant 0 : i32
    return %c0_i32, %c0_i32_0 : i32, i32
  }
  func.func @transform_7(%arg0: i32) -> (i32, i32) {
    %c0_i32 = arith.constant 0 : i32
    %c0_i32_0 = arith.constant 0 : i32
    return %c0_i32, %arg0 : i32, i32
  }
}

</mosaic_0001>

<bundles_post_ra>
// kernel: mlp_predictor_forward.1
= control target key start
LH: loop header
LB: loop body
LE: loop exit
PB: predicated region body
PF: predicated region fallthrough
CT: control target
= control target key end

     0   :  { %v1348_v3 = vmov 0.0   ;;  %s2301_s1 = inlined_call_operand.vmem [shape: f32[128,512], index: 1, kind: input, shape index: {}]   ;;  %s2302_s3 = inlined_call_operand.vmem [shape: f32[128,128], index: 3, kind: input, shape index: {}]   ;;  %s2303_s0 = inlined_call_operand.vmem [shape: f32[128,512], index: 0, kind: input, shape index: {}]   ;;  %s2304_s2 = inlined_call_operand.vmem [shape: f32[128,128], index: 2, kind: input, shape index: {}]   ;;  %s2305_s4 = inlined_call_operand.vmem [shape: f32[128,1], index: 4, kind: input, shape index: {}]   ;;  %s2306_s5 = inlined_call_operand.vmem [shape: f32[128,1], index: 5, kind: input, shape index: {}]   ;;  %s2307_s6 = inlined_call_operand.<no memory space> [shape: f32[1,1], index: 6, kind: input, shape index: {}]   ;;  %s2308_s7 = inlined_call_operand.vmem [shape: f32[1,512], index: 7, kind: output, shape index: {}]  }
   0x1   :  { %v184_v0 = vld [vmem:[%s2301_s1 + $0x1e8] sm:$0xff]  ;;  %v186_v1 = vld [vmem:[%s2301_s1 + $0x1f8] sm:$0xff]  ;;  %v183_v2 = vld [vmem:[%s2301_s1 + $0x1e0] sm:$0xff]  ;;  %251 = vmatprep.mubr.f32.mxu0 %v1348_v3  ;;  %412 = vmatprep.mubr.f32.mxu1 %v1348_v3 }
   0x2   :  { %187 = vmatprep.subr.mxu0 %v184_v0  ;;  %348 = vmatprep.subr.mxu1 %v186_v1  ;;  %v185_v4 = vld [vmem:[%s2301_s1 + $0x1f0] sm:$0xff]  ;;  %v180_v5 = vld [vmem:[%s2301_s1 + $0x1c8] sm:$0xff]  ;;  %v182_v6 = vld [vmem:[%s2301_s1 + $0x1d8] sm:$0xff] }
   0x3   :  { %188 = vmatpush1.msra.mxu0 %v183_v2  ;;  %349 = vmatpush1.msra.mxu1 %v185_v4  ;;  %v179_v7 = vld [vmem:[%s2301_s1 + $0x1c0] sm:$0xff]  ;;  %v181_v8 = vld [vmem:[%s2301_s1 + $0x1d0] sm:$0xff]  ;;  %v176_v9 = vld [vmem:[%s2301_s1 + $0x1a8] sm:$0xff] }
   0x4   :  { %189 = vmatprep.subr.mxu0 %v180_v5  ;;  %350 = vmatprep.subr.mxu1 %v182_v6  ;;  %v178_v10 = vld [vmem:[%s2301_s1 + $0x1b8] sm:$0xff]  ;;  %v175_v11 = vld [vmem:[%s2301_s1 + $0x1a0] sm:$0xff]  ;;  %v177_v12 = vld [vmem:[%s2301_s1 + $0x1b0] sm:$0xff] }
   0x5   :  { %190 = vmatpush1.msra.mxu0 %v179_v7  ;;  %351 = vmatpush1.msra.mxu1 %v181_v8  ;;  %v172_v13 = vld [vmem:[%s2301_s1 + $0x188] sm:$0xff]  ;;  %v174_v14 = vld [vmem:[%s2301_s1 + $0x198] sm:$0xff]  ;;  %v171_v15 = vld [vmem:[%s2301_s1 + $0x180] sm:$0xff] }
   0x6   :  { %191 = vmatprep.subr.mxu0 %v176_v9  ;;  %352 = vmatprep.subr.mxu1 %v178_v10  ;;  %v173_v16 = vld [vmem:[%s2301_s1 + $0x190] sm:$0xff]  ;;  %v168_v17 = vld [vmem:[%s2301_s1 + $0x168] sm:$0xff]  ;;  %v170_v18 = vld [vmem:[%s2301_s1 + $0x178] sm:$0xff] }
   0x7   :  { %192 = vmatpush1.msra.mxu0 %v175_v11  ;;  %353 = vmatpush1.msra.mxu1 %v177_v12  ;;  %v167_v19 = vld [vmem:[%s2301_s1 + $0x160] sm:$0xff]  ;;  %v169_v20 = vld [vmem:[%s2301_s1 + $0x170] sm:$0xff]  ;;  %v164_v21 = vld [vmem:[%s2301_s1 + $0x148] sm:$0xff] }
   0x8   :  { %193 = vmatprep.subr.mxu0 %v172_v13  ;;  %354 = vmatprep.subr.mxu1 %v174_v14  ;;  %v166_v22 = vld [vmem:[%s2301_s1 + $0x158] sm:$0xff]  ;;  %v163_v23 = vld [vmem:[%s2301_s1 + $0x140] sm:$0xff]  ;;  %v165_v24 = vld [vmem:[%s2301_s1 + $0x150] sm:$0xff] }
   0x9   :  { %194 = vmatpush1.msra.mxu0 %v171_v15  ;;  %355 = vmatpush1.msra.mxu1 %v173_v16  ;;  %v160_v25 = vld [vmem:[%s2301_s1 + $0x128] sm:$0xff]  ;;  %v162_v26 = vld [vmem:[%s2301_s1 + $0x138] sm:$0xff]  ;;  %v159_v27 = vld [vmem:[%s2301_s1 + $0x120] sm:$0xff] }
   0xa   :  { %195 = vmatprep.subr.mxu0 %v168_v17  ;;  %356 = vmatprep.subr.mxu1 %v170_v18  ;;  %v161_v28 = vld [vmem:[%s2301_s1 + $0x130] sm:$0xff]  ;;  %v156_v29 = vld [vmem:[%s2301_s1 + $0x108] sm:$0xff]  ;;  %v158_v30 = vld [vmem:[%s2301_s1 + $0x118] sm:$0xff] }
   0xb   :  { %196 = vmatpush1.msra.mxu0 %v167_v19  ;;  %357 = vmatpush1.msra.mxu1 %v169_v20  ;;  %v155_v31 = vld [vmem:[%s2301_s1 + $0x100] sm:$0xff]  ;;  %v157_v32 = vld [vmem:[%s2301_s1 + $0x110] sm:$0xff]  ;;  %v152_v33 = vld [vmem:[%s2301_s1 + $0xe8] sm:$0xff] }
   0xc   :  { %197 = vmatprep.subr.mxu0 %v164_v21  ;;  %358 = vmatprep.subr.mxu1 %v166_v22  ;;  %v154_v34 = vld [vmem:[%s2301_s1 + $0xf8] sm:$0xff]  ;;  %v151_v35 = vld [vmem:[%s2301_s1 + $0xe0] sm:$0xff]  ;;  %v153_v36 = vld [vmem:[%s2301_s1 + $0xf0] sm:$0xff] }
   0xd   :  { %198 = vmatpush1.msra.mxu0 %v163_v23  ;;  %359 = vmatpush1.msra.mxu1 %v165_v24  ;;  %v148_v37 = vld [vmem:[%s2301_s1 + $0xc8] sm:$0xff]  ;;  %v150_v38 = vld [vmem:[%s2301_s1 + $0xd8] sm:$0xff]  ;;  %v147_v39 = vld [vmem:[%s2301_s1 + $0xc0] sm:$0xff] }
   0xe   :  { %199 = vmatprep.subr.mxu0 %v160_v25  ;;  %360 = vmatprep.subr.mxu1 %v162_v26  ;;  %v149_v40 = vld [vmem:[%s2301_s1 + $0xd0] sm:$0xff]  ;;  %v144_v41 = vld [vmem:[%s2301_s1 + $0xa8] sm:$0xff]  ;;  %v146_v42 = vld [vmem:[%s2301_s1 + $0xb8] sm:$0xff] }
   0xf   :  { %200 = vmatpush1.msra.mxu0 %v159_v27  ;;  %361 = vmatpush1.msra.mxu1 %v161_v28  ;;  %v143_v43 = vld [vmem:[%s2301_s1 + $0xa0] sm:$0xff]  ;;  %v145_v44 = vld [vmem:[%s2301_s1 + $0xb0] sm:$0xff]  ;;  %v140_v45 = vld [vmem:[%s2301_s1 + $0x88] sm:$0xff] }
  0x10   :  { %201 = vmatprep.subr.mxu0 %v156_v29  ;;  %362 = vmatprep.subr.mxu1 %v158_v30  ;;  %v142_v46 = vld [vmem:[%s2301_s1 + $0x98] sm:$0xff]  ;;  %v139_v47 = vld [vmem:[%s2301_s1 + $0x80] sm:$0xff]  ;;  %v141_v48 = vld [vmem:[%s2301_s1 + $0x90] sm:$0xff] }
  0x11   :  { %202 = vmatpush1.msra.mxu0 %v155_v31  ;;  %363 = vmatpush1.msra.mxu1 %v157_v32  ;;  %v136_v49 = vld [vmem:[%s2301_s1 + $0x68] sm:$0xff]  ;;  %v138_v50 = vld [vmem:[%s2301_s1 + $0x78] sm:$0xff]  ;;  %v135_v51 = vld [vmem:[%s2301_s1 + $0x60] sm:$0xff] }
  0x12   :  { %203 = vmatprep.subr.mxu0 %v152_v33  ;;  %364 = vmatprep.subr.mxu1 %v154_v34  ;;  %v137_v52 = vld [vmem:[%s2301_s1 + $0x70] sm:$0xff]  ;;  %v132_v53 = vld [vmem:[%s2301_s1 + $0x48] sm:$0xff]  ;;  %v134_v54 = vld [vmem:[%s2301_s1 + $0x58] sm:$0xff] }
  0x13   :  { %204 = vmatpush1.msra.mxu0 %v151_v35  ;;  %365 = vmatpush1.msra.mxu1 %v153_v36  ;;  %v131_v55 = vld [vmem:[%s2301_s1 + $0x40] sm:$0xff]  ;;  %v133_v56 = vld [vmem:[%s2301_s1 + $0x50] sm:$0xff]  ;;  %v128_v57 = vld [vmem:[%s2301_s1 + $0x28] sm:$0xff] }
  0x14   :  { %205 = vmatprep.subr.mxu0 %v148_v37  ;;  %366 = vmatprep.subr.mxu1 %v150_v38  ;;  %v130_v58 = vld [vmem:[%s2301_s1 + $0x38] sm:$0xff]  ;;  %v127_v59 = vld [vmem:[%s2301_s1 + $0x20] sm:$0xff]  ;;  %v129_v60 = vld [vmem:[%s2301_s1 + $0x30] sm:$0xff] }
  0x15   :  { %206 = vmatpush1.msra.mxu0 %v147_v39  ;;  %367 = vmatpush1.msra.mxu1 %v149_v40  ;;  %v124_v61 = vld [vmem:[%s2301_s1 + $0x8] sm:$0xff]  ;;  %v126_v62 = vld [vmem:[%s2301_s1 + $0x18] sm:$0xff]  ;;  %v123_v63 = vld [vmem:[%s2301_s1] sm:$0xff] }
  0x16   :  { %207 = vmatprep.subr.mxu0 %v144_v41  ;;  %368 = vmatprep.subr.mxu1 %v146_v42  ;;  %v125_v0 = vld [vmem:[%s2301_s1 + $0x10] sm:$0xff]  ;;  %v107_v1 = vld [vmem:[%s2302_s3] sm:$0xff]  ;;  %v104_v2 = vld [vmem:[%s2303_s0 + $0x1e8] sm:$0xff] }
  0x17   :  { %208 = vmatpush1.msra.mxu0 %v143_v43  ;;  %369 = vmatpush1.msra.mxu1 %v145_v44  ;;  %v106_v4 = vld [vmem:[%s2303_s0 + $0x1f8] sm:$0xff]  ;;  %v103_v5 = vld [vmem:[%s2303_s0 + $0x1e0] sm:$0xff]  ;;  %v105_v6 = vld [vmem:[%s2303_s0 + $0x1f0] sm:$0xff] }
  0x18   :  { %209 = vmatprep.subr.mxu0 %v140_v45  ;;  %370 = vmatprep.subr.mxu1 %v142_v46  ;;  %v108_v7 = vld [vmem:[%s2302_s3 + $0x8] sm:$0xff]  ;;  %v102_v9 = vld [vmem:[%s2303_s0 + $0x1d8] sm:$0xff]  ;;  %v99_v10 = vld [vmem:[%s2303_s0 + $0x1c0] sm:$0xff] }
  0x19   :  { %210 = vmatpush1.msra.mxu0 %v139_v47  ;;  %371 = vmatpush1.msra.mxu1 %v141_v48  ;;  %v100_v8 = vld [vmem:[%s2303_s0 + $0x1c8] sm:$0xff]  ;;  %v101_v11 = vld [vmem:[%s2303_s0 + $0x1d0] sm:$0xff]  ;;  %v98_v14 = vld [vmem:[%s2303_s0 + $0x1b8] sm:$0xff] }
  0x1a   :  { %211 = vmatprep.subr.mxu0 %v136_v49  ;;  %372 = vmatprep.subr.mxu1 %v138_v50  ;;  %v109_v12 = vld [vmem:[%s2302_s3 + $0x10] sm:$0xff]  ;;  %v96_v13 = vld [vmem:[%s2303_s0 + $0x1a8] sm:$0xff]  ;;  %v95_v15 = vld [vmem:[%s2303_s0 + $0x1a0] sm:$0xff] }
  0x1b   :  { %212 = vmatpush1.msra.mxu0 %v135_v51  ;;  %373 = vmatpush1.msra.mxu1 %v137_v52  ;;  %v97_v16 = vld [vmem:[%s2303_s0 + $0x1b0] sm:$0xff]  ;;  %v110_v17 = vld [vmem:[%s2302_s3 + $0x18] sm:$0xff]  ;;  %v92_v18 = vld [vmem:[%s2303_s0 + $0x188] sm:$0xff] }
  0x1c   :  { %213 = vmatprep.subr.mxu0 %v132_v53  ;;  %374 = vmatprep.subr.mxu1 %v134_v54  ;;  %v94_v19 = vld [vmem:[%s2303_s0 + $0x198] sm:$0xff]  ;;  %v91_v20 = vld [vmem:[%s2303_s0 + $0x180] sm:$0xff]  ;;  %v93_v21 = vld [vmem:[%s2303_s0 + $0x190] sm:$0xff] }
  0x1d   :  { %214 = vmatpush1.msra.mxu0 %v131_v55  ;;  %375 = vmatpush1.msra.mxu1 %v133_v56  ;;  %v111_v22 = vld [vmem:[%s2302_s3 + $0x20] sm:$0xff]  ;;  %v88_v23 = vld [vmem:[%s2303_s0 + $0x168] sm:$0xff]  ;;  %v90_v24 = vld [vmem:[%s2303_s0 + $0x178] sm:$0xff] }
  0x1e   :  { %215 = vmatprep.subr.mxu0 %v128_v57  ;;  %376 = vmatprep.subr.mxu1 %v130_v58  ;;  %v87_v25 = vld [vmem:[%s2303_s0 + $0x160] sm:$0xff]  ;;  %v89_v26 = vld [vmem:[%s2303_s0 + $0x170] sm:$0xff]  ;;  %v112_v27 = vld [vmem:[%s2302_s3 + $0x28] sm:$0xff] }
  0x1f   :  { %216 = vmatpush1.msra.mxu0 %v127_v59  ;;  %377 = vmatpush1.msra.mxu1 %v129_v60  ;;  %v84_v28 = vld [vmem:[%s2303_s0 + $0x148] sm:$0xff]  ;;  %v86_v29 = vld [vmem:[%s2303_s0 + $0x158] sm:$0xff]  ;;  %v83_v30 = vld [vmem:[%s2303_s0 + $0x140] sm:$0xff] }
  0x20   :  { %217 = vmatprep.subr.mxu0 %v124_v61  ;;  %378 = vmatprep.subr.mxu1 %v126_v62  ;;  %v85_v31 = vld [vmem:[%s2303_s0 + $0x150] sm:$0xff]  ;;  %v80_v33 = vld [vmem:[%s2303_s0 + $0x128] sm:$0xff]  ;;  %v82_v34 = vld [vmem:[%s2303_s0 + $0x138] sm:$0xff] }
  0x21   :  { %218 = vmatpush1.msra.mxu0 %v123_v63  ;;  %379 = vmatpush1.msra.mxu1 %v125_v0  ;;  %v113_v32 = vld [vmem:[%s2302_s3 + $0x30] sm:$0xff]  ;;  %v79_v35 = vld [vmem:[%s2303_s0 + $0x120] sm:$0xff]  ;;  %v114_v37 = vld [vmem:[%s2302_s3 + $0x38] sm:$0xff] }
  0x22   :  { %252 = vmatmul.mubr.f32.vlgmr.msra.gmra.mxu0 %v107_v1  ;;  %413 = vmatmul.mubr.f32.vlgmr.msra.gmra.mxu1 %v107_v1  ;;  %v81_v36 = vld [vmem:[%s2303_s0 + $0x130] sm:$0xff]  ;;  %v76_v38 = vld [vmem:[%s2303_s0 + $0x108] sm:$0xff]  ;;  %v78_v39 = vld [vmem:[%s2303_s0 + $0x118] sm:$0xff] }
  0x23   :  { %509 = vmatprep.subr.mxu0 %v104_v2  ;;  %670 = vmatprep.subr.mxu1 %v106_v4  ;;  %v75_v40 = vld [vmem:[%s2303_s0 + $0x100] sm:$0xff]  ;;  %v77_v41 = vld [vmem:[%s2303_s0 + $0x110] sm:$0xff]  ;;  %v72_v43 = vld [vmem:[%s2303_s0 + $0xe8] sm:$0xff] }
  0x24   :  { %510 = vmatpush1.msra.mxu0 %v103_v5  ;;  %671 = vmatpush1.msra.mxu1 %v105_v6  ;;  %v115_v42 = vld [vmem:[%s2302_s3 + $0x40] sm:$0xff]  ;;  %v74_v44 = vld [vmem:[%s2303_s0 + $0xf8] sm:$0xff]  ;;  %v73_v46 = vld [vmem:[%s2303_s0 + $0xf0] sm:$0xff] }
  0x25   :  { %257 = vmatprep.mubr.f32.mxu0 %v1348_v3  ;;  %418 = vmatprep.mubr.f32.mxu1 %v1348_v3  ;;  %v71_v45 = vld [vmem:[%s2303_s0 + $0xe0] sm:$0xff]  ;;  %v116_v47 = vld [vmem:[%s2302_s3 + $0x48] sm:$0xff]  ;;  %v70_v49 = vld [vmem:[%s2303_s0 + $0xd8] sm:$0xff] }
  0x26   :  { %258 = vmatmul.mubr.f32.gmra.mxu0 %v108_v7  ;;  %419 = vmatmul.mubr.f32.gmra.mxu1 %v108_v7  ;;  %v68_v48 = vld [vmem:[%s2303_s0 + $0xc8] sm:$0xff]  ;;  %v67_v50 = vld [vmem:[%s2303_s0 + $0xc0] sm:$0xff]  ;;  %v69_v51 = vld [vmem:[%s2303_s0 + $0xd0] sm:$0xff] }
  0x27   :  { %511 = vmatprep.subr.mxu0 %v100_v8  ;;  %672 = vmatprep.subr.mxu1 %v102_v9  ;;  %v117_v52 = vld [vmem:[%s2302_s3 + $0x50] sm:$0xff]  ;;  %v64_v53 = vld [vmem:[%s2303_s0 + $0xa8] sm:$0xff]  ;;  %v66_v54 = vld [vmem:[%s2303_s0 + $0xb8] sm:$0xff] }
  0x28   :  { %512 = vmatpush1.msra.mxu0 %v99_v10  ;;  %673 = vmatpush1.msra.mxu1 %v101_v11  ;;  %v63_v55 = vld [vmem:[%s2303_s0 + $0xa0] sm:$0xff]  ;;  %v65_v56 = vld [vmem:[%s2303_s0 + $0xb0] sm:$0xff]  ;;  %v118_v57 = vld [vmem:[%s2302_s3 + $0x58] sm:$0xff] }
  0x29   :  { %263 = vmatprep.mubr.f32.mxu0 %v1348_v3  ;;  %424 = vmatprep.mubr.f32.mxu1 %v1348_v3  ;;  %v60_v58 = vld [vmem:[%s2303_s0 + $0x88] sm:$0xff]  ;;  %v62_v59 = vld [vmem:[%s2303_s0 + $0x98] sm:$0xff]  ;;  %v59_v60 = vld [vmem:[%s2303_s0 + $0x80] sm:$0xff] }
  0x2a   :  { %264 = vmatmul.mubr.f32.gmra.mxu0 %v109_v12  ;;  %425 = vmatmul.mubr.f32.gmra.mxu1 %v109_v12  ;;  %v61_v61 = vld [vmem:[%s2303_s0 + $0x90] sm:$0xff]  ;;  %v119_v62 = vld [vmem:[%s2302_s3 + $0x60] sm:$0xff]  ;;  %v56_v63 = vld [vmem:[%s2303_s0 + $0x68] sm:$0xff] }
  0x2b   :  { %513 = vmatprep.subr.mxu0 %v96_v13  ;;  %674 = vmatprep.subr.mxu1 %v98_v14  ;;  %v58_v0 = vld [vmem:[%s2303_s0 + $0x78] sm:$0xff]  ;;  %v55_v1 = vld [vmem:[%s2303_s0 + $0x60] sm:$0xff]  ;;  %v57_v2 = vld [vmem:[%s2303_s0 + $0x70] sm:$0xff] }
  0x2c   :  { %514 = vmatpush1.msra.mxu0 %v95_v15  ;;  %675 = vmatpush1.msra.mxu1 %v97_v16  ;;  %v120_v4 = vld [vmem:[%s2302_s3 + $0x68] sm:$0xff]  ;;  %v54_v6 = vld [vmem:[%s2303_s0 + $0x58] sm:$0xff]  ;;  %v51_v7 = vld [vmem:[%s2303_s0 + $0x40] sm:$0xff] }
  0x2d   :  { %269 = vmatprep.mubr.f32.mxu0 %v1348_v3  ;;  %430 = vmatprep.mubr.f32.mxu1 %v1348_v3  ;;  %v52_v5 = vld [vmem:[%s2303_s0 + $0x48] sm:$0xff]  ;;  %v53_v8 = vld [vmem:[%s2303_s0 + $0x50] sm:$0xff]  ;;  %v50_v11 = vld [vmem:[%s2303_s0 + $0x38] sm:$0xff] }
  0x2e   :  { %270 = vmatmul.mubr.f32.gmra.mxu0 %v110_v17  ;;  %431 = vmatmul.mubr.f32.gmra.mxu1 %v110_v17  ;;  %v121_v9 = vld [vmem:[%s2302_s3 + $0x70] sm:$0xff]  ;;  %v48_v10 = vld [vmem:[%s2303_s0 + $0x28] sm:$0xff]  ;;  %v47_v12 = vld [vmem:[%s2303_s0 + $0x20] sm:$0xff] }
  0x2f   :  { %515 = vmatprep.subr.mxu0 %v92_v18  ;;  %676 = vmatprep.subr.mxu1 %v94_v19  ;;  %v49_v13 = vld [vmem:[%s2303_s0 + $0x30] sm:$0xff]  ;;  %v122_v14 = vld [vmem:[%s2302_s3 + $0x78] sm:$0xff]  ;;  %v44_v15 = vld [vmem:[%s2303_s0 + $0x8] sm:$0xff] }
  0x30   :  { %516 = vmatpush1.msra.mxu0 %v91_v20  ;;  %677 = vmatpush1.msra.mxu1 %v93_v21  ;;  %v46_v16 = vld [vmem:[%s2303_s0 + $0x18] sm:$0xff]  ;;  %v43_v17 = vld [vmem:[%s2303_s0] sm:$0xff]  ;;  %v45_v18 = vld [vmem:[%s2303_s0 + $0x10] sm:$0xff] }
  0x31   :  { %275 = vmatprep.mubr.f32.mxu0 %v1348_v3  ;;  %436 = vmatprep.mubr.f32.mxu1 %v1348_v3  ;;  %v27_v19 = vld [vmem:[%s2304_s2] sm:$0xff]  ;;  %v833_v21 = vld [vmem:[%s2305_s4 + $0x10] sm:$0xff] }
  0x32   :  { %276 = vmatmul.mubr.f32.gmra.mxu0 %v111_v22  ;;  %437 = vmatmul.mubr.f32.gmra.mxu1 %v111_v22  ;;  %v831_v20 = vld [vmem:[%s2305_s4] sm:$0xff]  ;;  %v28_v22 = vld [vmem:[%s2304_s2 + $0x8] sm:$0xff] }
  0x33   :  { %517 = vmatprep.subr.mxu0 %v88_v23  ;;  %678 = vmatprep.subr.mxu1 %v90_v24  ;;  %v1349_v23 = vmov 0   ;;  %v832_v24 = vld [vmem:[%s2305_s4 + $0x8] sm:$0xff] }
  0x34   :  { %518 = vmatpush1.msra.mxu0 %v87_v25  ;;  %679 = vmatpush1.msra.mxu1 %v89_v26  ;;  %v834_v25 = vld [vmem:[%s2305_s4 + $0x18] sm:$0xff]  ;;  %v29_v26 = vld [vmem:[%s2304_s2 + $0x10] sm:$0xff] }
  0x35   :  { %281 = vmatprep.mubr.f32.mxu0 %v1348_v3  ;;  %442 = vmatprep.mubr.f32.mxu1 %v1348_v3 }
  0x36   :  { %282 = vmatmul.mubr.f32.gmra.mxu0 %v112_v27  ;;  %443 = vmatmul.mubr.f32.gmra.mxu1 %v112_v27  ;;  %v1055_v27 = vld [vmem:[%s2306_s5] sm:$0xff] }
  0x37   :  { %519 = vmatprep.subr.mxu0 %v84_v28  ;;  %680 = vmatprep.subr.mxu1 %v86_v29  ;;  %v1056_v28 = vld [vmem:[%s2306_s5 + $0x8] sm:$0xff]  ;;  %v30_v29 = vld [vmem:[%s2304_s2 + $0x18] sm:$0xff] }
  0x38   :  { %520 = vmatpush1.msra.mxu0 %v83_v30  ;;  %681 = vmatpush1.msra.mxu1 %v85_v31  ;;  %v835_v30 = vld [vmem:[%s2305_s4 + $0x20] sm:$0xff]  ;;  %v1057_v31 = vld [vmem:[%s2306_s5 + $0x10] sm:$0xff] }
  0x39   :  { %287 = vmatprep.mubr.f32.mxu0 %v1348_v3  ;;  %448 = vmatprep.mubr.f32.mxu1 %v1348_v3 }
  0x3a   :  { %288 = vmatmul.mubr.f32.gmra.mxu0 %v113_v32  ;;  %449 = vmatmul.mubr.f32.gmra.mxu1 %v113_v32  ;;  %v31_v32 = vld [vmem:[%s2304_s2 + $0x20] sm:$0xff] }
  0x3b   :  { %521 = vmatprep.subr.mxu0 %v80_v33  ;;  %682 = vmatprep.subr.mxu1 %v82_v34  ;;  %v836_v33 = vld [vmem:[%s2305_s4 + $0x28] sm:$0xff]  ;;  %v1058_v34 = vld [vmem:[%s2306_s5 + $0x18] sm:$0xff] }
  0x3c   :  { %522 = vmatpush1.msra.mxu0 %v79_v35  ;;  %683 = vmatpush1.msra.mxu1 %v81_v36  ;;  %v32_v35 = vld [vmem:[%s2304_s2 + $0x28] sm:$0xff]  ;;  %v837_v36 = vld [vmem:[%s2305_s4 + $0x30] sm:$0xff] }
  0x3d   :  { %293 = vmatprep.mubr.f32.mxu0 %v1348_v3  ;;  %454 = vmatprep.mubr.f32.mxu1 %v1348_v3 }
  0x3e   :  { %294 = vmatmul.mubr.f32.gmra.mxu0 %v114_v37  ;;  %455 = vmatmul.mubr.f32.gmra.mxu1 %v114_v37  ;;  %v1059_v37 = vld [vmem:[%s2306_s5 + $0x20] sm:$0xff] }
  0x3f   :  { %523 = vmatprep.subr.mxu0 %v76_v38  ;;  %684 = vmatprep.subr.mxu1 %v78_v39  ;;  %v33_v38 = vld [vmem:[%s2304_s2 + $0x30] sm:$0xff]  ;;  %v838_v39 = vld [vmem:[%s2305_s4 + $0x38] sm:$0xff] }
  0x40   :  { %524 = vmatpush1.msra.mxu0 %v75_v40  ;;  %685 = vmatpush1.msra.mxu1 %v77_v41  ;;  %v1060_v40 = vld [vmem:[%s2306_s5 + $0x28] sm:$0xff]  ;;  %v34_v41 = vld [vmem:[%s2304_s2 + $0x38] sm:$0xff] }
  0x41   :  { %299 = vmatprep.mubr.f32.mxu0 %v1348_v3  ;;  %460 = vmatprep.mubr.f32.mxu1 %v1348_v3 }
  0x42   :  { %300 = vmatmul.mubr.f32.gmra.mxu0 %v115_v42  ;;  %461 = vmatmul.mubr.f32.gmra.mxu1 %v115_v42  ;;  %v839_v42 = vld [vmem:[%s2305_s4 + $0x40] sm:$0xff] }
  0x43   :  { %525 = vmatprep.subr.mxu0 %v72_v43  ;;  %686 = vmatprep.subr.mxu1 %v74_v44  ;;  %v1061_v43 = vld [vmem:[%s2306_s5 + $0x30] sm:$0xff]  ;;  %v35_v44 = vld [vmem:[%s2304_s2 + $0x40] sm:$0xff] }
  0x44   :  { %526 = vmatpush1.msra.mxu0 %v71_v45  ;;  %687 = vmatpush1.msra.mxu1 %v73_v46  ;;  %v840_v45 = vld [vmem:[%s2305_s4 + $0x48] sm:$0xff]  ;;  %v1062_v46 = vld [vmem:[%s2306_s5 + $0x38] sm:$0xff] }
  0x45   :  { %305 = vmatprep.mubr.f32.mxu0 %v1348_v3  ;;  %466 = vmatprep.mubr.f32.mxu1 %v1348_v3 }
  0x46   :  { %306 = vmatmul.mubr.f32.gmra.mxu0 %v116_v47  ;;  %467 = vmatmul.mubr.f32.gmra.mxu1 %v116_v47  ;;  %v36_v47 = vld [vmem:[%s2304_s2 + $0x48] sm:$0xff] }
  0x47   :  { %527 = vmatprep.subr.mxu0 %v68_v48  ;;  %688 = vmatprep.subr.mxu1 %v70_v49  ;;  %v841_v48 = vld [vmem:[%s2305_s4 + $0x50] sm:$0xff]  ;;  %v1063_v49 = vld [vmem:[%s2306_s5 + $0x40] sm:$0xff] }
  0x48   :  { %528 = vmatpush1.msra.mxu0 %v67_v50  ;;  %689 = vmatpush1.msra.mxu1 %v69_v51  ;;  %v37_v50 = vld [vmem:[%s2304_s2 + $0x50] sm:$0xff]  ;;  %v842_v51 = vld [vmem:[%s2305_s4 + $0x58] sm:$0xff] }
  0x49   :  { %311 = vmatprep.mubr.f32.mxu0 %v1348_v3  ;;  %472 = vmatprep.mubr.f32.mxu1 %v1348_v3 }
  0x4a   :  { %312 = vmatmul.mubr.f32.gmra.mxu0 %v117_v52  ;;  %473 = vmatmul.mubr.f32.gmra.mxu1 %v117_v52  ;;  %v1064_v52 = vld [vmem:[%s2306_s5 + $0x48] sm:$0xff] }
  0x4b   :  { %529 = vmatprep.subr.mxu0 %v64_v53  ;;  %690 = vmatprep.subr.mxu1 %v66_v54  ;;  %v38_v53 = vld [vmem:[%s2304_s2 + $0x58] sm:$0xff]  ;;  %v843_v54 = vld [vmem:[%s2305_s4 + $0x60] sm:$0xff] }
  0x4c   :  { %530 = vmatpush1.msra.mxu0 %v63_v55  ;;  %691 = vmatpush1.msra.mxu1 %v65_v56  ;;  %v1065_v55 = vld [vmem:[%s2306_s5 + $0x50] sm:$0xff]  ;;  %v39_v56 = vld [vmem:[%s2304_s2 + $0x60] sm:$0xff] }
  0x4d   :  { %317 = vmatprep.mubr.f32.mxu0 %v1348_v3  ;;  %478 = vmatprep.mubr.f32.mxu1 %v1348_v3 }
  0x4e   :  { %318 = vmatmul.mubr.f32.gmra.mxu0 %v118_v57  ;;  %479 = vmatmul.mubr.f32.gmra.mxu1 %v118_v57  ;;  %v844_v57 = vld [vmem:[%s2305_s4 + $0x68] sm:$0xff] }
  0x4f   :  { %531 = vmatprep.subr.mxu0 %v60_v58  ;;  %692 = vmatprep.subr.mxu1 %v62_v59  ;;  %v1066_v58 = vld [vmem:[%s2306_s5 + $0x58] sm:$0xff]  ;;  %v40_v59 = vld [vmem:[%s2304_s2 + $0x68] sm:$0xff] }
  0x50   :  { %532 = vmatpush1.msra.mxu0 %v59_v60  ;;  %693 = vmatpush1.msra.mxu1 %v61_v61  ;;  %v845_v60 = vld [vmem:[%s2305_s4 + $0x70] sm:$0xff]  ;;  %v1067_v61 = vld [vmem:[%s2306_s5 + $0x60] sm:$0xff] }
  0x51   :  { %323 = vmatprep.mubr.f32.mxu0 %v1348_v3  ;;  %484 = vmatprep.mubr.f32.mxu1 %v1348_v3 }
  0x52   :  { %324 = vmatmul.mubr.f32.gmra.mxu0 %v119_v62  ;;  %485 = vmatmul.mubr.f32.gmra.mxu1 %v119_v62  ;;  %v41_v62 = vld [vmem:[%s2304_s2 + $0x70] sm:$0xff] }
  0x53   :  { %533 = vmatprep.subr.mxu0 %v56_v63  ;;  %694 = vmatprep.subr.mxu1 %v58_v0  ;;  %v846_v63 = vld [vmem:[%s2305_s4 + $0x78] sm:$0xff]  ;;  %v1068_v0 = vld [vmem:[%s2306_s5 + $0x68] sm:$0xff] }
  0x54   :  { %534 = vmatpush1.msra.mxu0 %v55_v1  ;;  %695 = vmatpush1.msra.mxu1 %v57_v2  ;;  %v42_v1 = vld [vmem:[%s2304_s2 + $0x78] sm:$0xff]  ;;  %v1069_v2 = vld [vmem:[%s2306_s5 + $0x70] sm:$0xff] }
  0x55   :  { %329 = vmatprep.mubr.f32.mxu0 %v1348_v3  ;;  %490 = vmatprep.mubr.f32.mxu1 %v1348_v3 }
  0x56   :  { %330 = vmatmul.mubr.f32.gmra.mxu0 %v120_v4  ;;  %491 = vmatmul.mubr.f32.gmra.mxu1 %v120_v4  ;;  %v1070_v4 = vld [vmem:[%s2306_s5 + $0x78] sm:$0xff] }
  0x57   :  { %535 = vmatprep.subr.mxu0 %v52_v5  ;;  %696 = vmatprep.subr.mxu1 %v54_v6 }
  0x58   :  { %536 = vmatpush1.msra.mxu0 %v51_v7  ;;  %697 = vmatpush1.msra.mxu1 %v53_v8 }
  0x59   :  { %335 = vmatprep.mubr.f32.mxu0 %v1348_v3  ;;  %496 = vmatprep.mubr.f32.mxu1 %v1348_v3 }
  0x5a   :  { %336 = vmatmul.mubr.f32.gmra.mxu0 %v121_v9  ;;  %497 = vmatmul.mubr.f32.gmra.mxu1 %v121_v9 }
  0x5b   :  { %537 = vmatprep.subr.mxu0 %v48_v10  ;;  %698 = vmatprep.subr.mxu1 %v50_v11 }
  0x5c   :  { %538 = vmatpush1.msra.mxu0 %v47_v12  ;;  %699 = vmatpush1.msra.mxu1 %v49_v13 }
  0x5d   :  { %341 = vmatprep.mubr.f32.mxu0 %v1348_v3  ;;  %502 = vmatprep.mubr.f32.mxu1 %v1348_v3 }
  0x5e   :  { %342 = vmatmul.mubr.f32.gmra.mxu0 %v122_v14  ;;  %503 = vmatmul.mubr.f32.gmra.mxu1 %v122_v14 }
  0x5f   :  { %539 = vmatprep.subr.mxu0 %v44_v15  ;;  %700 = vmatprep.subr.mxu1 %v46_v16 }
  0x60   :  { %540 = vmatpush1.msra.mxu0 %v43_v17  ;;  %701 = vmatpush1.msra.mxu1 %v45_v18 }
  0x61   :  { %573 = vmatprep.mubr.f32.mxu0 %v1348_v3  ;;  %734 = vmatprep.mubr.f32.mxu1 %v1348_v3 }
  0x62   :  { %574 = vmatmul.mubr.f32.vlgmr.msra.gmra.mxu0 %v27_v19  ;;  %735 = vmatmul.mubr.f32.vlgmr.msra.gmra.mxu1 %v27_v19 }
  0x63   :  { %579 = vmatprep.mubr.f32.mxu0 %v1348_v3  ;;  %740 = vmatprep.mubr.f32.mxu1 %v1348_v3 }
  0x64   :  { %1346 = vset.pattern.permute.xlu0 %v1349_v23  ;;  %1347 = vset.pattern.permute.xlu1 %v1349_v23 }
  0x65   :  { %849 = vperm.xlu0 %1346, %v831_v20   ;;  %859 = vperm.xlu1 %1347, %v833_v21  }
  0x66   :  { %580 = vmatmul.mubr.f32.gmra.mxu0 %v28_v22  ;;  %741 = vmatmul.mubr.f32.gmra.mxu1 %v28_v22 }
  0x67   :  { %585 = vmatprep.mubr.f32.mxu0 %v1348_v3  ;;  %746 = vmatprep.mubr.f32.mxu1 %v1348_v3 }
  0x69   :  { %854 = vperm.xlu0 %1346, %v832_v24   ;;  %864 = vperm.xlu1 %1347, %v834_v25  }
  0x6a   :  { %586 = vmatmul.mubr.f32.gmra.mxu0 %v29_v26  ;;  %747 = vmatmul.mubr.f32.gmra.mxu1 %v29_v26 }
  0x6b   :  { %591 = vmatprep.mubr.f32.mxu0 %v1348_v3  ;;  %752 = vmatprep.mubr.f32.mxu1 %v1348_v3 }
  0x6d   :  { %1073 = vperm.xlu0 %1346, %v1055_v27   ;;  %1078 = vperm.xlu1 %1347, %v1056_v28  }
  0x6e   :  { %592 = vmatmul.mubr.f32.gmra.mxu0 %v30_v29  ;;  %753 = vmatmul.mubr.f32.gmra.mxu1 %v30_v29 }
  0x6f   :  { %597 = vmatprep.mubr.f32.mxu0 %v1348_v3  ;;  %758 = vmatprep.mubr.f32.mxu1 %v1348_v3 }
  0x71   :  { %869 = vperm.xlu0 %1346, %v835_v30   ;;  %1083 = vperm.xlu1 %1347, %v1057_v31  }
  0x72   :  { %598 = vmatmul.mubr.f32.gmra.mxu0 %v31_v32  ;;  %759 = vmatmul.mubr.f32.gmra.mxu1 %v31_v32 }
  0x73   :  { %603 = vmatprep.mubr.f32.mxu0 %v1348_v3  ;;  %764 = vmatprep.mubr.f32.mxu1 %v1348_v3 }
  0x75   :  { %874 = vperm.xlu0 %1346, %v836_v33   ;;  %1088 = vperm.xlu1 %1347, %v1058_v34  }
  0x76   :  { %604 = vmatmul.mubr.f32.gmra.mxu0 %v32_v35  ;;  %765 = vmatmul.mubr.f32.gmra.mxu1 %v32_v35 }
  0x77   :  { %609 = vmatprep.mubr.f32.mxu0 %v1348_v3  ;;  %770 = vmatprep.mubr.f32.mxu1 %v1348_v3 }
  0x79   :  { %879 = vperm.xlu0 %1346, %v837_v36   ;;  %1093 = vperm.xlu1 %1347, %v1059_v37  }
  0x7a   :  { %610 = vmatmul.mubr.f32.gmra.mxu0 %v33_v38  ;;  %771 = vmatmul.mubr.f32.gmra.mxu1 %v33_v38 }
  0x7b   :  { %615 = vmatprep.mubr.f32.mxu0 %v1348_v3  ;;  %776 = vmatprep.mubr.f32.mxu1 %v1348_v3 }
  0x7d   :  { %884 = vperm.xlu0 %1346, %v838_v39   ;;  %1098 = vperm.xlu1 %1347, %v1060_v40  }
  0x7e   :  { %616 = vmatmul.mubr.f32.gmra.mxu0 %v34_v41  ;;  %777 = vmatmul.mubr.f32.gmra.mxu1 %v34_v41 }
  0x7f   :  { %621 = vmatprep.mubr.f32.mxu0 %v1348_v3  ;;  %782 = vmatprep.mubr.f32.mxu1 %v1348_v3 }
  0x81   :  { %889 = vperm.xlu0 %1346, %v839_v42   ;;  %1103 = vperm.xlu1 %1347, %v1061_v43  }
  0x82   :  { %622 = vmatmul.mubr.f32.gmra.mxu0 %v35_v44  ;;  %783 = vmatmul.mubr.f32.gmra.mxu1 %v35_v44 }
  0x83   :  { %627 = vmatprep.mubr.f32.mxu0 %v1348_v3  ;;  %788 = vmatprep.mubr.f32.mxu1 %v1348_v3 }
  0x85   :  { %894 = vperm.xlu0 %1346, %v840_v45   ;;  %1108 = vperm.xlu1 %1347, %v1062_v46  }
  0x86   :  { %628 = vmatmul.mubr.f32.gmra.mxu0 %v36_v47  ;;  %789 = vmatmul.mubr.f32.gmra.mxu1 %v36_v47 }
  0x87   :  { %633 = vmatprep.mubr.f32.mxu0 %v1348_v3  ;;  %794 = vmatprep.mubr.f32.mxu1 %v1348_v3 }
  0x89   :  { %899 = vperm.xlu0 %1346, %v841_v48   ;;  %1113 = vperm.xlu1 %1347, %v1063_v49  }
  0x8a   :  { %634 = vmatmul.mubr.f32.gmra.mxu0 %v37_v50  ;;  %795 = vmatmul.mubr.f32.gmra.mxu1 %v37_v50 }
  0x8b   :  { %639 = vmatprep.mubr.f32.mxu0 %v1348_v3  ;;  %800 = vmatprep.mubr.f32.mxu1 %v1348_v3 }
  0x8d   :  { %904 = vperm.xlu0 %1346, %v842_v51   ;;  %1118 = vperm.xlu1 %1347, %v1064_v52  }
  0x8e   :  { %640 = vmatmul.mubr.f32.gmra.mxu0 %v38_v53  ;;  %801 = vmatmul.mubr.f32.gmra.mxu1 %v38_v53 }
  0x8f   :  { %645 = vmatprep.mubr.f32.mxu0 %v1348_v3  ;;  %806 = vmatprep.mubr.f32.mxu1 %v1348_v3 }
  0x91   :  { %909 = vperm.xlu0 %1346, %v843_v54   ;;  %1123 = vperm.xlu1 %1347, %v1065_v55  }
  0x92   :  { %646 = vmatmul.mubr.f32.gmra.mxu0 %v39_v56  ;;  %807 = vmatmul.mubr.f32.gmra.mxu1 %v39_v56 }
  0x93   :  { %651 = vmatprep.mubr.f32.mxu0 %v1348_v3  ;;  %812 = vmatprep.mubr.f32.mxu1 %v1348_v3 }
  0x95   :  { %914 = vperm.xlu0 %1346, %v844_v57   ;;  %1128 = vperm.xlu1 %1347, %v1066_v58  }
  0x96   :  { %652 = vmatmul.mubr.f32.gmra.mxu0 %v40_v59  ;;  %813 = vmatmul.mubr.f32.gmra.mxu1 %v40_v59 }
  0x97   :  { %657 = vmatprep.mubr.f32.mxu0 %v1348_v3  ;;  %818 = vmatprep.mubr.f32.mxu1 %v1348_v3 }
  0x99   :  { %919 = vperm.xlu0 %1346, %v845_v60   ;;  %1133 = vperm.xlu1 %1347, %v1067_v61  }
  0x9a   :  { %658 = vmatmul.mubr.f32.gmra.mxu0 %v41_v62  ;;  %819 = vmatmul.mubr.f32.gmra.mxu1 %v41_v62 }
  0x9b   :  { %663 = vmatprep.mubr.f32.mxu0 %v1348_v3  ;;  %824 = vmatprep.mubr.f32.mxu1 %v1348_v3 }
  0x9d   :  { %924 = vperm.xlu0 %1346, %v846_v63   ;;  %1138 = vperm.xlu1 %1347, %v1068_v0  }
  0x9e   :  { %664 = vmatmul.mubr.f32.gmra.mxu0 %v42_v1  ;;  %825 = vmatmul.mubr.f32.gmra.mxu1 %v42_v1 }
  0xa1   :  { %1143 = vperm.xlu0 %1346, %v1069_v2   ;;  %1148 = vperm.xlu1 %1347, %v1070_v4  }
  0xe0   :  { %v850_v54 = vpop.permute.xlu0 %849  ;;  %v2135_v57 = vpop.permute.xlu1 %859 }
  0xe2   :  { %v2031_v5 = vpop.f32.mrf.mxu0  ;;  %v2033_v3 = vpop.f32.mrf.mxu1 }
  0xe4   :  { %v2035_v6 = vpop.f32.mrf.mxu0  ;;  %v2037_v7 = vpop.f32.mrf.mxu1 }
  0xe5   :  { %v855_v62 = vpop.permute.xlu0 %854  ;;  %v2149_v1 = vpop.permute.xlu1 %864 }
  0xe6   :  { %v2039_v8 = vpop.f32.mrf.mxu0  ;;  %v2041_v9 = vpop.f32.mrf.mxu1 }
  0xe8   :  { %v2043_v10 = vpop.f32.mrf.mxu0  ;;  %v2045_v11 = vpop.f32.mrf.mxu1 }
  0xea   :  { %v2047_v12 = vpop.f32.mrf.mxu0  ;;  %v2049_v13 = vpop.f32.mrf.mxu1 }
  0xec   :  { %v2051_v14 = vpop.f32.mrf.mxu0  ;;  %v2053_v15 = vpop.f32.mrf.mxu1 }
  0xee   :  { %v2055_v16 = vpop.f32.mrf.mxu0  ;;  %v2057_v17 = vpop.f32.mrf.mxu1 }
  0xf0   :  { %v2059_v18 = vpop.f32.mrf.mxu0  ;;  %v2061_v19 = vpop.f32.mrf.mxu1 }
  0xf2   :  { %v2063_v20 = vpop.f32.mrf.mxu0  ;;  %v2065_v21 = vpop.f32.mrf.mxu1 }
  0xf4   :  { %v2067_v22 = vpop.f32.mrf.mxu0  ;;  %v2069_v23 = vpop.f32.mrf.mxu1 }
  0xf6   :  { %v2071_v24 = vpop.f32.mrf.mxu0  ;;  %v2073_v25 = vpop.f32.mrf.mxu1 }
  0xf8   :  { %v2075_v26 = vpop.f32.mrf.mxu0  ;;  %v2077_v27 = vpop.f32.mrf.mxu1 }
  0xfa   :  { %v2079_v28 = vpop.f32.mrf.mxu0  ;;  %v2081_v29 = vpop.f32.mrf.mxu1 }
  0xfc   :  { %v2083_v30 = vpop.f32.mrf.mxu0  ;;  %v2085_v31 = vpop.f32.mrf.mxu1 }
  0xfe   :  { %v2087_v32 = vpop.f32.mrf.mxu0  ;;  %v2089_v33 = vpop.f32.mrf.mxu1 }
 0x100   :  { %v2091_v34 = vpop.f32.mrf.mxu0  ;;  %v2093_v35 = vpop.f32.mrf.mxu1 }
 0x102   :  { %v2095_v36 = vpop.f32.mrf.mxu0  ;;  %v2097_v37 = vpop.f32.mrf.mxu1 }
 0x104   :  { %v2099_v38 = vpop.f32.mrf.mxu0  ;;  %v2101_v39 = vpop.f32.mrf.mxu1 }
 0x106   :  { %v2103_v40 = vpop.f32.mrf.mxu0  ;;  %v2105_v41 = vpop.f32.mrf.mxu1 }
 0x108   :  { %v2107_v42 = vpop.f32.mrf.mxu0  ;;  %v2109_v43 = vpop.f32.mrf.mxu1 }
 0x109   :  { %2309 = vst [vmem:[#allocation3_spill] sm:$0xff] %v2107_v42  ;;  %2310 = vst [vmem:[#allocation4_spill] sm:$0xff] %v2109_v43 }
 0x10a   :  { %v2111_v44 = vpop.f32.mrf.mxu0  ;;  %v2113_v45 = vpop.f32.mrf.mxu1 }
 0x10b   :  { %2311 = vst [vmem:[#allocation5_spill] sm:$0xff] %v2111_v44  ;;  %2312 = vst [vmem:[#allocation6_spill] sm:$0xff] %v2113_v45 }
 0x10c   :  { %v2115_v46 = vpop.f32.mrf.mxu0  ;;  %v2117_v47 = vpop.f32.mrf.mxu1 }
 0x10d   :  { %2313 = vst [vmem:[#allocation7_spill] sm:$0xff] %v2115_v46  ;;  %2314 = vst [vmem:[#allocation8_spill] sm:$0xff] %v2117_v47 }
 0x10e   :  { %v2119_v48 = vpop.f32.mrf.mxu0  ;;  %v2121_v49 = vpop.f32.mrf.mxu1 }
 0x10f   :  { %2315 = vst [vmem:[#allocation9_spill] sm:$0xff] %v2119_v48  ;;  %2316 = vst [vmem:[#allocation10_spill] sm:$0xff] %v2121_v49 }
 0x110   :  { %v2123_v50 = vpop.f32.mrf.mxu0  ;;  %v2125_v51 = vpop.f32.mrf.mxu1 }
 0x111   :  { %2317 = vst [vmem:[#allocation11_spill] sm:$0xff] %v2123_v50  ;;  %2318 = vst [vmem:[#allocation12_spill] sm:$0xff] %v2125_v51 }
 0x112   :  { %v2127_v52 = vpop.f32.mrf.mxu0  ;;  %v2129_v53 = vpop.f32.mrf.mxu1 }
 0x113   :  { %2319 = vst [vmem:[#allocation13_spill] sm:$0xff] %v2127_v52  ;;  %2320 = vst [vmem:[#allocation14_spill] sm:$0xff] %v2129_v53 }
 0x114   :  { %v2131_v55 = vpop.f32.mrf.mxu0  ;;  %v2133_v56 = vpop.f32.mrf.mxu1 }
 0x115   :  { %2321 = vst [vmem:[#allocation15_spill] sm:$0xff] %v2131_v55  ;;  %2322 = vst [vmem:[#allocation16_spill] sm:$0xff] %v2133_v56 }
 0x116   :  { %v2137_v58 = vpop.f32.mrf.mxu0  ;;  %v2139_v59 = vpop.f32.mrf.mxu1 }
 0x117   :  { %2323 = vst [vmem:[#allocation17_spill] sm:$0xff] %v2137_v58  ;;  %2324 = vst [vmem:[#allocation18_spill] sm:$0xff] %v2139_v59  ;;  %v1074_v59 = vpop.permute.xlu0 %1073 }
 0x118   :  { %v2141_v60 = vpop.f32.mrf.mxu0  ;;  %v2143_v61 = vpop.f32.mrf.mxu1 }
 0x119   :  { %2325 = vst [vmem:[#allocation19_spill] sm:$0xff] %v2141_v60  ;;  %2326 = vst [vmem:[#allocation20_spill] sm:$0xff] %v2143_v61  ;;  %v1079_v61 = vpop.permute.xlu1 %1078 }
 0x11a   :  { %v2145_v63 = vpop.f32.mrf.mxu0  ;;  %v2147_v0 = vpop.f32.mrf.mxu1 }
 0x11b   :  { %2327 = vst [vmem:[#allocation21_spill] sm:$0xff] %v2145_v63  ;;  %2328 = vst [vmem:[#allocation22_spill] sm:$0xff] %v2147_v0  ;;  %v2165_v50 = vpop.permute.xlu0 %869 }
 0x11c   :  { %v2151_v2 = vpop.f32.mrf.mxu0  ;;  %v2153_v4 = vpop.f32.mrf.mxu1 }
 0x11d   :  { %2329 = vst [vmem:[#allocation23_spill] sm:$0xff] %v2151_v2  ;;  %2330 = vst [vmem:[#allocation24_spill] sm:$0xff] %v2153_v4 }
 0x11e   :  { %v2155_v56 = vpop.f32.mrf.mxu0  ;;  %v2157_v58 = vpop.f32.mrf.mxu1 }
 0x11f   :  { %2331 = vst [vmem:[#allocation25_spill] sm:$0xff] %v2155_v56  ;;  %2332 = vst [vmem:[#allocation26_spill] sm:$0xff] %v2157_v58 }
 0x120   :  { %v2159_v55 = vpop.f32.mrf.mxu0  ;;  %v2161_v60 = vpop.f32.mrf.mxu1 }
 0x121   :  { %2333 = vst [vmem:[#allocation27_spill] sm:$0xff] %v2159_v55  ;;  %2334 = vst [vmem:[#allocation28_spill] sm:$0xff] %v2161_v60  ;;  %v2169_v60 = vpop.permute.xlu1 %1083 }
 0x122   :  { %v575_v53 = vpop.f32.mrf.mxu0  ;;  %v736_v63 = vpop.f32.mrf.mxu1 }
 0x123   :  { %v576_v0 = vadd.f32 %v575_v53, %v2031_v5  ;;  %v737_v52 = vadd.f32 %v736_v63, %v2033_v3 }
 0x124   :  { %v577_v51 = vpop.f32.mrf.mxu0  ;;  %v738_v2 = vpop.f32.mrf.mxu1 }
 0x125   :  { %v927_v4 = vadd.f32 %v850_v54, %v576_v0  ;;  %v929_v56 = vadd.f32 %v850_v54, %v737_v52  ;;  %v578_v58 = vadd.f32 %v577_v51, %v2035_v6  ;;  %v739_v49 = vadd.f32 %v738_v2, %v2037_v7 }
 0x126   :  { %v581_v55 = vpop.f32.mrf.mxu0  ;;  %v742_v48 = vpop.f32.mrf.mxu1 }
 0x127   :  { %v991_v47 = vmax.f32 %v927_v4, 0.0  ;;  %v993_v46 = vmax.f32 %v929_v56, 0.0  ;;  %v928_v45 = vadd.f32 %v850_v54, %v578_v58  ;;  %v930_v5 = vadd.f32 %v850_v54, %v739_v49  ;;  %v2175_v58 = vpop.permute.xlu0 %874 }
 0x128   :  { %v582_v3 = vadd.f32 %v581_v55, %v2039_v8  ;;  %v743_v53 = vadd.f32 %v742_v48, %v2041_v9  ;;  %v583_v63 = vpop.f32.mrf.mxu0  ;;  %v744_v44 = vpop.f32.mrf.mxu1 }
 0x129   :  { %v1151_v0 = vmul.f32 %v1074_v59, %v991_v47  ;;  %v1153_v52 = vmul.f32 %v1074_v59, %v993_v46  ;;  %v992_v43 = vmax.f32 %v928_v45, 0.0  ;;  %v994_v6 = vmax.f32 %v930_v5, 0.0 }
 0x12a   :  { %v931_v51 = vadd.f32 %v855_v62, %v582_v3  ;;  %v933_v7 = vadd.f32 %v855_v62, %v743_v53  ;;  %v584_v2 = vadd.f32 %v583_v63, %v2043_v10  ;;  %v745_v42 = vadd.f32 %v744_v44, %v2045_v11  ;;  %v587_v4 = vpop.f32.mrf.mxu0  ;;  %v748_v56 = vpop.f32.mrf.mxu1 }
 0x12b   :  { %v1152_v49 = vmul.f32 %v1074_v59, %v992_v43  ;;  %v1154_v8 = vmul.f32 %v1074_v59, %v994_v6  ;;  %v588_v9 = vadd.f32 %v587_v4, %v2047_v12  ;;  %v749_v48 = vadd.f32 %v748_v56, %v2049_v13  ;;  %v2179_v3 = vpop.permute.xlu1 %1088 }
 0x12c   :  { %v995_v47 = vmax.f32 %v931_v51, 0.0  ;;  %v997_v46 = vmax.f32 %v933_v7, 0.0  ;;  %v932_v45 = vadd.f32 %v855_v62, %v584_v2  ;;  %v934_v54 = vadd.f32 %v855_v62, %v745_v42  ;;  %v589_v55 = vpop.f32.mrf.mxu0  ;;  %v750_v5 = vpop.f32.mrf.mxu1 }
 0x12d   :  { %v935_v10 = vadd.f32 %v2135_v57, %v588_v9  ;;  %v937_v11 = vadd.f32 %v2135_v57, %v749_v48  ;;  %v590_v44 = vadd.f32 %v589_v55, %v2051_v14  ;;  %v751_v43 = vadd.f32 %v750_v5, %v2053_v15  ;;  %v2187_v55 = vpop.permute.xlu0 %879 }
 0x12e   :  { %v1155_v59 = vmul.f32 %v1079_v61, %v995_v47  ;;  %v1157_v12 = vmul.f32 %v1079_v61, %v997_v46  ;;  %v996_v53 = vmax.f32 %v932_v45, 0.0  ;;  %v998_v13 = vmax.f32 %v934_v54, 0.0  ;;  %v593_v63 = vpop.f32.mrf.mxu0  ;;  %v754_v6 = vpop.f32.mrf.mxu1 }
 0x12f   :  { %v999_v51 = vmax.f32 %v935_v10, 0.0  ;;  %v1001_v42 = vmax.f32 %v937_v11, 0.0  ;;  %v936_v62 = vadd.f32 %v2135_v57, %v590_v44  ;;  %v938_v7 = vadd.f32 %v2135_v57, %v751_v43  ;;  %v1094_v11 = vpop.permute.xlu1 %1093 }
 0x130   :  { %v1215_v2 = vadd.f32 %v1155_v59, %v1151_v0  ;;  %v1257_v4 = vadd.f32 %v1157_v12, %v1153_v52  ;;  %v1156_v56 = vmul.f32 %v1079_v61, %v996_v53  ;;  %v1158_v9 = vmul.f32 %v1079_v61, %v998_v13  ;;  %v595_v48 = vpop.f32.mrf.mxu0  ;;  %v756_v14 = vpop.f32.mrf.mxu1 }
 0x131   :  { %v1159_v15 = vmul.f32 %v2169_v60, %v999_v51  ;;  %v1161_v47 = vmul.f32 %v2169_v60, %v1001_v42  ;;  %v1000_v46 = vmax.f32 %v936_v62, 0.0  ;;  %v1002_v45 = vmax.f32 %v938_v7, 0.0 }
 0x132   :  { %v1236_v54 = vadd.f32 %v1156_v56, %v1152_v49  ;;  %v1278_v5 = vadd.f32 %v1158_v9, %v1154_v8  ;;  %v594_v10 = vadd.f32 %v593_v63, %v2055_v16  ;;  %v755_v57 = vadd.f32 %v754_v6, %v2057_v17  ;;  %v599_v0 = vpop.f32.mrf.mxu0  ;;  %v760_v52 = vpop.f32.mrf.mxu1 }
 0x133   :  { %v1216_v61 = vadd.f32 %v1215_v2, %v1159_v15  ;;  %v1258_v44 = vadd.f32 %v1257_v4, %v1161_v47  ;;  %v1160_v43 = vmul.f32 %v2169_v60, %v1000_v46  ;;  %v1162_v59 = vmul.f32 %v2169_v60, %v1002_v45  ;;  %v2203_v56 = vpop.permute.xlu0 %884  ;;  %v1099_v46 = vpop.permute.xlu1 %1098 }
 0x134   :  { %v939_v12 = vadd.f32 %v2149_v1, %v594_v10  ;;  %v941_v53 = vadd.f32 %v2149_v1, %v755_v57  ;;  %v596_v49 = vadd.f32 %v595_v48, %v2059_v18  ;;  %v757_v8 = vadd.f32 %v756_v14, %v2061_v19  ;;  %v601_v16 = vpop.f32.mrf.mxu0  ;;  %v762_v13 = vpop.f32.mrf.mxu1 }
 0x135   :  { %v1237_v17 = vadd.f32 %v1236_v54, %v1160_v43  ;;  %v1279_v63 = vadd.f32 %v1278_v5, %v1162_v59  ;;  %v600_v6 = vadd.f32 %v599_v0, %v2063_v20  ;;  %v761_v51 = vadd.f32 %v760_v52, %v2065_v21 }
 0x136   :  { %v1003_v42 = vmax.f32 %v939_v12, 0.0  ;;  %v1005_v62 = vmax.f32 %v941_v53, 0.0  ;;  %v940_v60 = vadd.f32 %v2149_v1, %v596_v49  ;;  %v942_v7 = vadd.f32 %v2149_v1, %v757_v8  ;;  %v605_v2 = vpop.f32.mrf.mxu0  ;;  %v766_v4 = vpop.f32.mrf.mxu1 }
 0x137   :  { %v943_v18 = vadd.f32 %v2165_v50, %v600_v6  ;;  %v945_v19 = vadd.f32 %v2165_v50, %v761_v51  ;;  %v602_v9 = vadd.f32 %v601_v16, %v2067_v22  ;;  %v763_v20 = vadd.f32 %v762_v13, %v2069_v23  ;;  %v2217_v13 = vpop.permute.xlu0 %889 }
 0x138   :  { %v1163_v21 = vmul.f32 %v2179_v3, %v1003_v42  ;;  %v1165_v48 = vmul.f32 %v2179_v3, %v1005_v62  ;;  %v1004_v14 = vmax.f32 %v940_v60, 0.0  ;;  %v1006_v15 = vmax.f32 %v942_v7, 0.0  ;;  %v607_v47 = vpop.f32.mrf.mxu0  ;;  %v768_v1 = vpop.f32.mrf.mxu1 }
 0x139   :  { %v1007_v45 = vmax.f32 %v943_v18, 0.0  ;;  %v1009_v54 = vmax.f32 %v945_v19, 0.0  ;;  %v944_v5 = vadd.f32 %v2165_v50, %v602_v9  ;;  %v946_v10 = vadd.f32 %v2165_v50, %v763_v20  ;;  %v1104_v7 = vpop.permute.xlu1 %1103 }
 0x13a   :  { %v1164_v57 = vmul.f32 %v2179_v3, %v1004_v14  ;;  %v1166_v22 = vmul.f32 %v2179_v3, %v1006_v15  ;;  %v611_v23 = vpop.f32.mrf.mxu0  ;;  %v772_v0 = vpop.f32.mrf.mxu1  ;;  %v1217_v59 = vadd.f32 %v1216_v61, %v1163_v21  ;;  %v1259_v12 = vadd.f32 %v1258_v44, %v1165_v48 }
 0x13b   :  { %v1008_v52 = vmax.f32 %v944_v5, 0.0  ;;  %v1010_v43 = vmax.f32 %v946_v10, 0.0  ;;  %v606_v53 = vadd.f32 %v605_v2, %v2071_v24  ;;  %v767_v49 = vadd.f32 %v766_v4, %v2073_v25 }
 0x13c   :  { %v613_v8 = vpop.f32.mrf.mxu0  ;;  %v774_v16 = vpop.f32.mrf.mxu1  ;;  %v1238_v6 = vadd.f32 %v1237_v17, %v1164_v57  ;;  %v1280_v50 = vadd.f32 %v1279_v63, %v1166_v22  ;;  %v1167_v51 = vmul.f32 %v1094_v11, %v1007_v45  ;;  %v1169_v42 = vmul.f32 %v1094_v11, %v1009_v54 }
 0x13d   :  { %v947_v3 = vadd.f32 %v2175_v58, %v606_v53  ;;  %v949_v62 = vadd.f32 %v2175_v58, %v767_v49  ;;  %v608_v60 = vadd.f32 %v607_v47, %v2075_v26  ;;  %v769_v61 = vadd.f32 %v768_v1, %v2077_v27  ;;  %v2231_v45 = vpop.permute.xlu0 %894 }
 0x13e   :  { %v617_v44 = vpop.f32.mrf.mxu0  ;;  %v778_v24 = vpop.f32.mrf.mxu1  ;;  %v1168_v25 = vmul.f32 %v1094_v11, %v1008_v52  ;;  %v1170_v2 = vmul.f32 %v1094_v11, %v1010_v43  ;;  %v612_v4 = vadd.f32 %v611_v23, %v2079_v28  ;;  %v773_v17 = vadd.f32 %v772_v0, %v2081_v29 }
 0x13f   :  { %v1011_v63 = vmax.f32 %v947_v3, 0.0  ;;  %v1013_v18 = vmax.f32 %v949_v62, 0.0  ;;  %v948_v19 = vadd.f32 %v2175_v58, %v608_v60  ;;  %v950_v9 = vadd.f32 %v2175_v58, %v769_v61  ;;  %v1109_v52 = vpop.permute.xlu1 %1108 }
 0x140   :  { %v619_v20 = vpop.f32.mrf.mxu0  ;;  %v780_v21 = vpop.f32.mrf.mxu1  ;;  %v951_v26 = vadd.f32 %v2187_v55, %v612_v4  ;;  %v953_v27 = vadd.f32 %v2187_v55, %v773_v17  ;;  %v614_v48 = vadd.f32 %v613_v8, %v2083_v30  ;;  %v775_v11 = vadd.f32 %v774_v16, %v2085_v31 }
 0x141   :  { %v1171_v14 = vmul.f32 %v1099_v46, %v1011_v63  ;;  %v1173_v28 = vmul.f32 %v1099_v46, %v1013_v18  ;;  %v1012_v15 = vmax.f32 %v948_v19, 0.0  ;;  %v1014_v29 = vmax.f32 %v950_v9, 0.0  ;;  %v2241_v17 = vpop.permute.xlu0 %899 }
 0x142   :  { %v623_v47 = vpop.f32.mrf.mxu0  ;;  %v784_v1 = vpop.f32.mrf.mxu1  ;;  %v1015_v54 = vmax.f32 %v951_v26, 0.0  ;;  %v1017_v58 = vmax.f32 %v953_v27, 0.0  ;;  %v952_v5 = vadd.f32 %v2187_v55, %v614_v48  ;;  %v954_v10 = vadd.f32 %v2187_v55, %v775_v11 }
 0x143   :  { %v1218_v57 = vadd.f32 %v1217_v59, %v1167_v51  ;;  %v1260_v22 = vadd.f32 %v1259_v12, %v1169_v42  ;;  %v1172_v23 = vmul.f32 %v1099_v46, %v1012_v15  ;;  %v1174_v30 = vmul.f32 %v1099_v46, %v1014_v29 }
 0x144   :  { %v625_v0 = vpop.f32.mrf.mxu0  ;;  %v786_v31 = vpop.f32.mrf.mxu1  ;;  %v1239_v43 = vadd.f32 %v1238_v6, %v1168_v25  ;;  %v1281_v53 = vadd.f32 %v1280_v50, %v1170_v2  ;;  %v1016_v49 = vmax.f32 %v952_v5, 0.0  ;;  %v1018_v8 = vmax.f32 %v954_v10, 0.0 }
 0x145   :  { %v1219_v16 = vadd.f32 %v1218_v57, %v1171_v14  ;;  %v1261_v3 = vadd.f32 %v1260_v22, %v1173_v28  ;;  %v618_v62 = vadd.f32 %v617_v44, %v2087_v32  ;;  %v779_v60 = vadd.f32 %v778_v24, %v2089_v33  ;;  %v2253_v57 = vpop.permute.xlu0 %904 }
 0x146   :  { %v629_v61 = vpop.f32.mrf.mxu0  ;;  %v790_v4 = vpop.f32.mrf.mxu1  ;;  %v1240_v55 = vadd.f32 %v1239_v43, %v1172_v23  ;;  %v1282_v59 = vadd.f32 %v1281_v53, %v1174_v30  ;;  %v1175_v12 = vmul.f32 %v1104_v7, %v1015_v54  ;;  %v1177_v51 = vmul.f32 %v1104_v7, %v1017_v58 }
 0x147   :  { %v955_v46 = vadd.f32 %v2203_v56, %v618_v62  ;;  %v957_v42 = vadd.f32 %v2203_v56, %v779_v60  ;;  %v620_v6 = vadd.f32 %v619_v20, %v2091_v34  ;;  %v781_v50 = vadd.f32 %v780_v21, %v2093_v35  ;;  %v1114_v20 = vpop.permute.xlu1 %1113 }
 0x148   :  { %v631_v25 = vpop.f32.mrf.mxu0  ;;  %v792_v2 = vpop.f32.mrf.mxu1  ;;  %v1176_v32 = vmul.f32 %v1104_v7, %v1016_v49  ;;  %v1178_v33 = vmul.f32 %v1104_v7, %v1018_v8  ;;  %v624_v44 = vadd.f32 %v623_v47, %v2095_v36  ;;  %v785_v24 = vadd.f32 %v784_v1, %v2097_v37 }
 0x149   :  { %v1019_v63 = vmax.f32 %v955_v46, 0.0  ;;  %v1021_v18 = vmax.f32 %v957_v42, 0.0  ;;  %v956_v19 = vadd.f32 %v2203_v56, %v620_v6  ;;  %v958_v9 = vadd.f32 %v2203_v56, %v781_v50  ;;  %v2338_v50 = vld [vmem:[#allocation6_spill] sm:$0xff] }
 0x14a   :  { %v635_v26 = vpop.f32.mrf.mxu0  ;;  %v796_v34 = vpop.f32.mrf.mxu1  ;;  %v959_v35 = vadd.f32 %v2217_v13, %v624_v44  ;;  %v961_v21 = vadd.f32 %v2217_v13, %v785_v24  ;;  %v626_v27 = vadd.f32 %v625_v0, %v2099_v38  ;;  %v787_v7 = vadd.f32 %v786_v31, %v2101_v39 }
 0x14b   :  { %v1179_v36 = vmul.f32 %v1109_v52, %v1019_v63  ;;  %v1181_v48 = vmul.f32 %v1109_v52, %v1021_v18  ;;  %v1020_v37 = vmax.f32 %v956_v19, 0.0  ;;  %v1022_v11 = vmax.f32 %v958_v9, 0.0  ;;  %v1119_v8 = vpop.permute.xlu1 %1118  ;;  %v2339_v19 = vld [vmem:[#allocation7_spill] sm:$0xff]  ;;  %v2340_v9 = vld [vmem:[#allocation8_spill] sm:$0xff] }
 0x14c   :  { %v637_v14 = vpop.f32.mrf.mxu0  ;;  %v798_v28 = vpop.f32.mrf.mxu1  ;;  %v1023_v15 = vmax.f32 %v959_v35, 0.0  ;;  %v1025_v29 = vmax.f32 %v961_v21, 0.0  ;;  %v960_v56 = vadd.f32 %v2217_v13, %v626_v27  ;;  %v962_v47 = vadd.f32 %v2217_v13, %v787_v7 }
 0x14d   :  { %v1220_v1 = vadd.f32 %v1219_v16, %v1175_v12  ;;  %v1262_v54 = vadd.f32 %v1261_v3, %v1177_v51  ;;  %v1180_v58 = vmul.f32 %v1109_v52, %v1020_v37  ;;  %v1182_v5 = vmul.f32 %v1109_v52, %v1022_v11  ;;  %v2336_v51 = vld [vmem:[#allocation4_spill] sm:$0xff]  ;;  %v910_v27 = vpop.permute.xlu0 %909 }
 0x14e   :  { %v641_v10 = vpop.f32.mrf.mxu0  ;;  %v802_v38 = vpop.f32.mrf.mxu1  ;;  %v1241_v39 = vadd.f32 %v1240_v55, %v1176_v32  ;;  %v1283_v22 = vadd.f32 %v1282_v59, %v1178_v33  ;;  %v1024_v23 = vmax.f32 %v960_v56, 0.0  ;;  %v1026_v30 = vmax.f32 %v962_v47, 0.0  ;;  %v2335_v59 = vld [vmem:[#allocation3_spill] sm:$0xff] }
 0x14f   :  { %v1221_v0 = vadd.f32 %v1220_v1, %v1179_v36  ;;  %v1263_v31 = vadd.f32 %v1262_v54, %v1181_v48  ;;  %v630_v43 = vadd.f32 %v629_v61, %v2103_v40  ;;  %v791_v53 = vadd.f32 %v790_v4, %v2105_v41  ;;  %v2337_v41 = vld [vmem:[#allocation5_spill] sm:$0xff] }
 0x150   :  { %v643_v49 = vpop.f32.mrf.mxu0  ;;  %v804_v13 = vpop.f32.mrf.mxu1  ;;  %v1242_v16 = vadd.f32 %v1241_v39, %v1180_v58  ;;  %v1284_v3 = vadd.f32 %v1283_v22, %v1182_v5  ;;  %v1183_v52 = vmul.f32 %v1114_v20, %v1023_v15  ;;  %v1185_v62 = vmul.f32 %v1114_v20, %v1025_v29  ;;  %v2341_v22 = vld [vmem:[#allocation9_spill] sm:$0xff] }
 0x151   :  { %v963_v60 = vadd.f32 %v2231_v45, %v630_v43  ;;  %v965_v55 = vadd.f32 %v2231_v45, %v791_v53  ;;  %v632_v12 = vadd.f32 %v631_v25, %v2335_v59  ;;  %v793_v46 = vadd.f32 %v792_v2, %v2336_v51  ;;  %v1124_v15 = vpop.permute.xlu1 %1123 }
 0x152   :  { %v647_v42 = vpop.f32.mrf.mxu0  ;;  %v808_v6 = vpop.f32.mrf.mxu1  ;;  %v1184_v40 = vmul.f32 %v1114_v20, %v1024_v23  ;;  %v1186_v61 = vmul.f32 %v1114_v20, %v1026_v30  ;;  %v636_v4 = vadd.f32 %v635_v26, %v2337_v41  ;;  %v797_v32 = vadd.f32 %v796_v34, %v2338_v50  ;;  %v2342_v30 = vld [vmem:[#allocation10_spill] sm:$0xff] }
 0x153   :  { %v1027_v33 = vmax.f32 %v963_v60, 0.0  ;;  %v1029_v44 = vmax.f32 %v965_v55, 0.0  ;;  %v964_v24 = vadd.f32 %v2231_v45, %v632_v12  ;;  %v966_v63 = vadd.f32 %v2231_v45, %v793_v46  ;;  %v2345_v46 = vld [vmem:[#allocation13_spill] sm:$0xff] }
 0x154   :  { %v967_v18 = vadd.f32 %v2241_v17, %v636_v4  ;;  %v969_v25 = vadd.f32 %v2241_v17, %v797_v32  ;;  %v638_v2 = vadd.f32 %v637_v14, %v2339_v19  ;;  %v799_v35 = vadd.f32 %v798_v28, %v2340_v9  ;;  %v649_v21 = vpop.f32.mrf.mxu0  ;;  %v810_v20 = vpop.f32.mrf.mxu1 }
 0x155   :  { %v1187_v26 = vmul.f32 %v1119_v8, %v1027_v33  ;;  %v1189_v7 = vmul.f32 %v1119_v8, %v1029_v44  ;;  %v1028_v34 = vmax.f32 %v964_v24, 0.0  ;;  %v1030_v36 = vmax.f32 %v966_v63, 0.0  ;;  %v1129_v33 = vpop.permute.xlu1 %1128 }
 0x156   :  { %v1031_v48 = vmax.f32 %v967_v18, 0.0  ;;  %v1033_v37 = vmax.f32 %v969_v25, 0.0  ;;  %v968_v11 = vadd.f32 %v2241_v17, %v638_v2  ;;  %v970_v45 = vadd.f32 %v2241_v17, %v799_v35  ;;  %v653_v54 = vpop.f32.mrf.mxu0  ;;  %v814_v58 = vpop.f32.mrf.mxu1 }
 0x157   :  { %v1222_v29 = vadd.f32 %v1221_v0, %v1183_v52  ;;  %v1264_v56 = vadd.f32 %v1263_v31, %v1185_v62  ;;  %v1243_v47 = vadd.f32 %v1242_v16, %v1184_v40  ;;  %v1285_v14 = vadd.f32 %v1284_v3, %v1186_v61  ;;  %v915_v17 = vpop.permute.xlu0 %914  ;;  %v2343_v16 = vld [vmem:[#allocation11_spill] sm:$0xff]  ;;  %v2344_v52 = vld [vmem:[#allocation12_spill] sm:$0xff] }
 0x158   :  { %v1032_v1 = vmax.f32 %v968_v11, 0.0  ;;  %v1034_v28 = vmax.f32 %v970_v45, 0.0  ;;  %v642_v23 = vadd.f32 %v641_v10, %v2341_v22  ;;  %v803_v43 = vadd.f32 %v802_v38, %v2342_v30  ;;  %v2346_v10 = vld [vmem:[#allocation14_spill] sm:$0xff]  ;;  %v655_v38 = vpop.f32.mrf.mxu0  ;;  %v816_v41 = vpop.f32.mrf.mxu1 }
 0x159   :  { %v1223_v5 = vadd.f32 %v1222_v29, %v1187_v26  ;;  %v1265_v39 = vadd.f32 %v1264_v56, %v1189_v7  ;;  %v1188_v53 = vmul.f32 %v1119_v8, %v1028_v34  ;;  %v1190_v60 = vmul.f32 %v1119_v8, %v1030_v36 }
 0x15a   :  { %v1191_v55 = vmul.f32 %v1124_v15, %v1031_v48  ;;  %v1193_v59 = vmul.f32 %v1124_v15, %v1033_v37  ;;  %v971_v0 = vadd.f32 %v2253_v57, %v642_v23  ;;  %v973_v31 = vadd.f32 %v2253_v57, %v803_v43  ;;  %v659_v7 = vpop.f32.mrf.mxu0  ;;  %v820_v34 = vpop.f32.mrf.mxu1 }
 0x15b   :  { %v644_v3 = vadd.f32 %v643_v49, %v2343_v16  ;;  %v805_v62 = vadd.f32 %v804_v13, %v2344_v52  ;;  %v1192_v12 = vmul.f32 %v1124_v15, %v1032_v1  ;;  %v1194_v51 = vmul.f32 %v1124_v15, %v1034_v28  ;;  %v2347_v49 = vld [vmem:[#allocation15_spill] sm:$0xff]  ;;  %v2348_v13 = vld [vmem:[#allocation16_spill] sm:$0xff]  ;;  %v920_v36 = vpop.permute.xlu0 %919  ;;  %v1134_v43 = vpop.permute.xlu1 %1133  ;;  %v2353_v16 = vld [vmem:[#allocation21_spill] sm:$0xff] }
 0x15c   :  { %v648_v40 = vadd.f32 %v647_v42, %v2345_v46  ;;  %v809_v61 = vadd.f32 %v808_v6, %v2346_v10  ;;  %v1035_v8 = vmax.f32 %v971_v0, 0.0  ;;  %v1037_v4 = vmax.f32 %v973_v31, 0.0  ;;  %v822_v30 = vpop.f32.mrf.mxu1 }
 0x15d   :  { %v972_v50 = vadd.f32 %v2253_v57, %v644_v3  ;;  %v974_v32 = vadd.f32 %v2253_v57, %v805_v62  ;;  %v650_v63 = vadd.f32 %v649_v21, %v2347_v49  ;;  %v811_v18 = vadd.f32 %v810_v20, %v2348_v13  ;;  %v2349_v20 = vld [vmem:[#allocation17_spill] sm:$0xff] }
 0x15e   :  { %v975_v44 = vadd.f32 %v910_v27, %v648_v40  ;;  %v977_v24 = vadd.f32 %v910_v27, %v809_v61  ;;  %v1244_v25 = vadd.f32 %v1243_v47, %v1188_v53  ;;  %v1286_v19 = vadd.f32 %v1285_v14, %v1190_v60  ;;  %v2350_v47 = vld [vmem:[#allocation18_spill] sm:$0xff]  ;;  %v2355_v61 = vld [vmem:[#allocation23_spill] sm:$0xff] }
 0x15f   :  { %v1195_v42 = vmul.f32 %v1129_v33, %v1035_v8  ;;  %v1197_v2 = vmul.f32 %v1129_v33, %v1037_v4  ;;  %v1036_v6 = vmax.f32 %v972_v50, 0.0  ;;  %v1038_v9 = vmax.f32 %v974_v32, 0.0  ;;  %v2356_v4 = vld [vmem:[#allocation24_spill] sm:$0xff]  ;;  %v826_v32 = vpop.f32.mrf.mxu1 }
 0x160   :  { %v976_v35 = vadd.f32 %v910_v27, %v650_v63  ;;  %v978_v26 = vadd.f32 %v910_v27, %v811_v18  ;;  %v1224_v48 = vadd.f32 %v1223_v5, %v1191_v55  ;;  %v1266_v57 = vadd.f32 %v1265_v39, %v1193_v59  ;;  %v661_v27 = vpop.f32.mrf.mxu0  ;;  %v2351_v39 = vld [vmem:[#allocation19_spill] sm:$0xff]  ;;  %v2352_v55 = vld [vmem:[#allocation20_spill] sm:$0xff] }
 0x161   :  { %v1245_v37 = vadd.f32 %v1244_v25, %v1192_v12  ;;  %v1287_v11 = vadd.f32 %v1286_v19, %v1194_v51  ;;  %v1039_v45 = vmax.f32 %v975_v44, 0.0  ;;  %v1041_v15 = vmax.f32 %v977_v24, 0.0  ;;  %v1139_v25 = vpop.permute.xlu1 %1138 }
 0x162   :  { %v1225_v21 = vadd.f32 %v1224_v48, %v1195_v42  ;;  %v1267_v29 = vadd.f32 %v1266_v57, %v1197_v2  ;;  %v654_v56 = vadd.f32 %v653_v54, %v2349_v20  ;;  %v815_v14 = vadd.f32 %v814_v58, %v2350_v47  ;;  %v2354_v54 = vld [vmem:[#allocation22_spill] sm:$0xff]  ;;  %v925_v58 = vpop.permute.xlu0 %924 }
 0x163   :  { %v1196_v1 = vmul.f32 %v1129_v33, %v1036_v6  ;;  %v1198_v28 = vmul.f32 %v1129_v33, %v1038_v9  ;;  %v1040_v22 = vmax.f32 %v976_v35, 0.0  ;;  %v1042_v23 = vmax.f32 %v978_v26, 0.0 }
 0x164   :  { %v979_v53 = vadd.f32 %v915_v17, %v654_v56  ;;  %v981_v5 = vadd.f32 %v915_v17, %v815_v14  ;;  %v656_v60 = vadd.f32 %v655_v38, %v2351_v39  ;;  %v817_v59 = vadd.f32 %v816_v41, %v2352_v55  ;;  %v665_v38 = vpop.f32.mrf.mxu0  ;;  %v2358_v56 = vld [vmem:[#allocation26_spill] sm:$0xff] }
 0x165   :  { %v1199_v0 = vmul.f32 %v1134_v43, %v1039_v45  ;;  %v1201_v31 = vmul.f32 %v1134_v43, %v1041_v15  ;;  %v660_v3 = vadd.f32 %v659_v7, %v2353_v16  ;;  %v821_v52 = vadd.f32 %v820_v34, %v2354_v54  ;;  %v828_v34 = vpop.f32.mrf.mxu1  ;;  %v2357_v15 = vld [vmem:[#allocation25_spill] sm:$0xff] }
 0x166   :  { %v1043_v62 = vmax.f32 %v979_v53, 0.0  ;;  %v1045_v12 = vmax.f32 %v981_v5, 0.0  ;;  %v980_v51 = vadd.f32 %v915_v17, %v656_v60  ;;  %v982_v46 = vadd.f32 %v915_v17, %v817_v59  ;;  %v667_v7 = vpop.f32.mrf.mxu0  ;;  %v1144_v48 = vpop.permute.xlu0 %1143 }
 0x167   :  { %v983_v40 = vadd.f32 %v920_v36, %v660_v3  ;;  %v985_v10 = vadd.f32 %v920_v36, %v821_v52  ;;  %v662_v8 = vadd.f32 %v661_v27, %v2355_v61  ;;  %v823_v50 = vadd.f32 %v822_v30, %v2356_v4  ;;  %v1149_v59 = vpop.permute.xlu1 %1148 }
 0x168   :  { %v1200_v41 = vmul.f32 %v1134_v43, %v1040_v22  ;;  %v1202_v33 = vmul.f32 %v1134_v43, %v1042_v23  ;;  %v1044_v44 = vmax.f32 %v980_v51, 0.0  ;;  %v1046_v24 = vmax.f32 %v982_v46, 0.0 }
 0x169   :  { %v1047_v49 = vmax.f32 %v983_v40, 0.0  ;;  %v1049_v63 = vmax.f32 %v985_v10, 0.0  ;;  %v984_v13 = vadd.f32 %v920_v36, %v662_v8  ;;  %v986_v18 = vadd.f32 %v920_v36, %v823_v50 }
 0x16a   :  { %v1246_v19 = vadd.f32 %v1245_v37, %v1196_v1  ;;  %v1288_v42 = vadd.f32 %v1287_v11, %v1198_v28  ;;  %v1226_v17 = vadd.f32 %v1225_v21, %v1199_v0  ;;  %v1268_v2 = vadd.f32 %v1267_v29, %v1201_v31  ;;  %v2359_v29 = vld [vmem:[#allocation27_spill] sm:$0xff]  ;;  %v2360_v28 = vld [vmem:[#allocation28_spill] sm:$0xff] }
 0x16b   :  { %v1203_v6 = vmul.f32 %v1139_v25, %v1043_v62  ;;  %v1205_v9 = vmul.f32 %v1139_v25, %v1045_v12  ;;  %v1048_v35 = vmax.f32 %v984_v13, 0.0  ;;  %v1050_v26 = vmax.f32 %v986_v18, 0.0 }
 0x16c   :  { %v1247_v57 = vadd.f32 %v1246_v19, %v1200_v41  ;;  %v1289_v45 = vadd.f32 %v1288_v42, %v1202_v33  ;;  %v666_v20 = vadd.f32 %v665_v38, %v2357_v15  ;;  %v827_v47 = vadd.f32 %v826_v32, %v2358_v56 }
 0x16d   :  { %v1204_v14 = vmul.f32 %v1139_v25, %v1044_v44  ;;  %v1206_v36 = vmul.f32 %v1139_v25, %v1046_v24  ;;  %v1207_v22 = vmul.f32 %v1144_v48, %v1047_v49  ;;  %v1209_v37 = vmul.f32 %v1144_v48, %v1049_v63 }
 0x16e   :  { %v987_v11 = vadd.f32 %v925_v58, %v666_v20  ;;  %v989_v21 = vadd.f32 %v925_v58, %v827_v47  ;;  %v668_v1 = vadd.f32 %v667_v7, %v2359_v29  ;;  %v829_v23 = vadd.f32 %v828_v34, %v2360_v28 }
 0x16f   :  { %v1227_v27 = vadd.f32 %v1226_v17, %v1203_v6  ;;  %v1269_v30 = vadd.f32 %v1268_v2, %v1205_v9  ;;  %v1208_v43 = vmul.f32 %v1144_v48, %v1048_v35  ;;  %v1210_v53 = vmul.f32 %v1144_v48, %v1050_v26 }
 0x170   :  { %v1051_v5 = vmax.f32 %v987_v11, 0.0  ;;  %v1053_v39 = vmax.f32 %v989_v21, 0.0  ;;  %v988_v60 = vadd.f32 %v925_v58, %v668_v1  ;;  %v990_v55 = vadd.f32 %v925_v58, %v829_v23 }
 0x171   :  { %v1248_v0 = vadd.f32 %v1247_v57, %v1204_v14  ;;  %v1290_v31 = vadd.f32 %v1289_v45, %v1206_v36  ;;  %v1228_v16 = vadd.f32 %v1227_v27, %v1207_v22  ;;  %v1270_v3 = vadd.f32 %v1269_v30, %v1209_v37 }
 0x172   :  { %v1211_v54 = vmul.f32 %v1149_v59, %v1051_v5  ;;  %v1213_v52 = vmul.f32 %v1149_v59, %v1053_v39  ;;  %v1052_v62 = vmax.f32 %v988_v60, 0.0  ;;  %v1054_v12 = vmax.f32 %v990_v55, 0.0 }
 0x173   :  { %v1249_v51 = vadd.f32 %v1248_v0, %v1208_v43  ;;  %v1291_v46 = vadd.f32 %v1290_v31, %v1210_v53  ;;  %v1350_v18 = vmov 1966171168   ;;  %v1314_v19 = vlaneseq }
 0x174   :  { %v1229_v40 = vadd.f32 %v1228_v16, %v1211_v54  ;;  %v1271_v10 = vadd.f32 %v1270_v3, %v1213_v52  ;;  %v1212_v61 = vmul.f32 %v1149_v59, %v1052_v62  ;;  %v1214_v8 = vmul.f32 %v1149_v59, %v1054_v12 }
 0x175   :  { %v1312_v25 = vunpack.c.l.s4 %v1350_v18  ;;  %v1315_v48 = vshrl.u32 %v1314_v19, 7  ;;  %v1300_v56 = vstv %s2307_s6  ;;  %vm1336_vm0 = vcmp.lt.s32.totalorder %v1314_v19, 512 }
 0x176   :  { %v1230_v4 = vrot.slane %v1229_v40, 4  ;;  %v1272_v50 = vrot.slane %v1271_v10, 4  ;;  %v1250_v38 = vadd.f32 %v1249_v51, %v1212_v61  ;;  %v1292_v32 = vadd.f32 %v1291_v46, %v1214_v8 }
 0x177   :  { %v1313_v34 = vunpack.c.0.s8 %v1312_v25 }
 0x178   :  { %v1231_v58 = vadd.f32 %v1230_v4, %v1229_v40  ;;  %v1273_v41 = vadd.f32 %v1272_v50, %v1271_v10  ;;  %v1251_v33 = vrot.slane %v1250_v38, 4  ;;  %v1293_v44 = vrot.slane %v1292_v32, 4 }
 0x179   :  { %v1316_v36 = vsub.s32 %v1313_v34, %v1315_v48 }
 0x17a   :  { %v1232_v24 = vrot.slane %v1231_v58, 2  ;;  %v1274_v49 = vrot.slane %v1273_v41, 2  ;;  %v1252_v63 = vadd.f32 %v1251_v33, %v1250_v38  ;;  %v1294_v13 = vadd.f32 %v1293_v44, %v1292_v32 }
 0x17c   :  { %v1233_v42 = vadd.f32 %v1232_v24, %v1231_v58  ;;  %v1275_v17 = vadd.f32 %v1274_v49, %v1273_v41  ;;  %v1253_v2 = vrot.slane %v1252_v63, 2  ;;  %v1295_v6 = vrot.slane %v1294_v13, 2 }
 0x17e   :  { %v1234_v9 = vrot.slane %v1233_v42, 1  ;;  %v1276_v35 = vrot.slane %v1275_v17, 1  ;;  %v1254_v26 = vadd.f32 %v1253_v2, %v1252_v63  ;;  %v1296_v7 = vadd.f32 %v1295_v6, %v1294_v13 }
 0x180   :  { %v1235_v57 = vadd.f32 %v1234_v9, %v1233_v42  ;;  %v1277_v45 = vadd.f32 %v1276_v35, %v1275_v17  ;;  %v1255_v15 = vrot.slane %v1254_v26, 1  ;;  %v1297_v20 = vrot.slane %v1296_v7, 1 }
 0x182   :  { %v1256_v47 = vadd.f32 %v1255_v15, %v1254_v26  ;;  %v1298_v14 = vadd.f32 %v1297_v20, %v1296_v7  ;;  %v1301_v22 = vadd.f32 %v1300_v56, %v1235_v57  ;;  %v1303_v37 = vadd.f32 %v1300_v56, %v1277_v45 }
 0x184   :  { %v1302_v11 = vadd.f32 %v1300_v56, %v1256_v47  ;;  %v1304_v21 = vadd.f32 %v1300_v56, %v1298_v14 }
 0x186   :  { %v1309_v29 = vcombine.low %v1301_v22, %v1302_v11  ;;  %v1310_v1 = vcombine.low %v1303_v37, %v1304_v21 }
 0x188   :  { %v1317_v28 = vrot.slane %v1309_v29, %v1316_v36  ;;  %v1324_v23 = vrot.slane %v1310_v1, %v1316_v36 }
 0x18a   :  { %v1325_v27 = vcombine.low %v1317_v28, %v1324_v23 }
 0x18c   :  { %v1332_v30 = vrot.slane %v1325_v27, %v1316_v36 }
 0x18e   :  { %1338 = vst.msk [vmem:[%s2308_s7] sm:$0xf] %vm1336_vm0, %v1332_v30 }

</bundles_post_ra>
